<compile_context>
chip_gen: v6e
topology: v6e:2x2x1
jax: 0.10.0
libtpu: 0.0.40
codegen_flags: <defaults>
</compile_context>

<pallas_src>
import functools
import math

import jax
import jax.numpy as jnp
from jax.experimental import pallas as pl
from jax.experimental.pallas import tpu as pltpu

EPS = 1e-5
NEG_INF = -1e9


def _vmem_limit_bytes():
    """Per-generation scoped-VMEM request: ~3/4 of physical, capped, >= 32 MiB."""
    cap = 64 * 1024 * 1024
    try:
        cap = int(getattr(pltpu.get_tpu_info(), "vmem_capacity_bytes", cap))
    except Exception:
        pass
    return max(32 * 1024 * 1024, min((cap * 3) // 4, 100 * 1024 * 1024))


VMEM_LIMIT = _vmem_limit_bytes()


def _pick_tile(dim, target, align):
    """Largest tile <= target that divides dim and is align-aligned; falls back to the
    full dimension (full-extent blocks always satisfy the (8,128) rule)."""
    if dim <= target:
        return dim
    t = target
    while t >= align and dim % t != 0:
        t //= 2
    if t >= align and dim % t == 0:
        return t
    return dim


# ----------------------- tiled matmul (x @ w.T), bf16 -> f32 -----------------------

def _mm_nt_kernel(x_ref, w_ref, o_ref, acc_ref):
    @pl.when(pl.program_id(2) == 0)
    def _():
        acc_ref[...] = jnp.zeros_like(acc_ref)

    # Contract the last dim of both operands: x (tm, tk) . w (tn, tk) -> (tm, tn).
    acc_ref[...] += jax.lax.dot_general(
        x_ref[...], w_ref[...],
        dimension_numbers=(((1,), (1,)), ((), ())),
        preferred_element_type=jnp.float32)

    @pl.when(pl.program_id(2) == pl.num_programs(2) - 1)
    def _():
        o_ref[...] = acc_ref[...].astype(o_ref.dtype)


def pallas_matmul_nt(x, w):
    """x: (M, K) bf16 @ w.T where w: (N, K) bf16 stays in its natural layout -> f32."""
    M, K = x.shape
    N, K2 = w.shape
    assert K == K2
    tm = _pick_tile(M, 512, 16)     # bf16 sublane alignment
    tn = _pick_tile(N, 512, 128)    # lane dim of the output block
    tk = _pick_tile(K, 512, 128)
    grid = (M // tm, N // tn, K // tk)
    return pl.pallas_call(
        _mm_nt_kernel,
        out_shape=jax.ShapeDtypeStruct((M, N), jnp.float32),
        grid=grid,
        in_specs=[pl.BlockSpec((tm, tk), lambda i, j, k: (i, k)),
                  pl.BlockSpec((tn, tk), lambda i, j, k: (j, k))],
        out_specs=pl.BlockSpec((tm, tn), lambda i, j, k: (i, j)),
        scratch_shapes=[pltpu.VMEM((tm, tn), jnp.float32)],
        compiler_params=pltpu.CompilerParams(
            dimension_semantics=("parallel", "parallel", "arbitrary"),
            vmem_limit_bytes=VMEM_LIMIT),
    )(x, w)


# ------- fused [Q/K/V projection + MHA + out-proj + residual Add&LayerNorm] -------

def _mha_block_kernel(xq_ref, xkv_ref, wq_ref, wk_ref, wv_ref, wo_ref,
                      g_ref, b_ref, o_ref, *, scale, causal):
    nhead, dm, dk = wq_ref.shape
    tq = xq_ref.shape[1]
    Sk = xkv_ref.shape[1]

    xq = xq_ref[0]                                   # (tq, dm)  bf16  (also residual)
    xkv = xkv_ref[0]                                 # (Sk, dm)  bf16

    # Head-batched projections: weights are pre-split per head outside the kernel, so
    # no lane-dim reshape/transpose is needed here.  Contraction K = dm (full width).
    xq_b = jnp.broadcast_to(xq, (nhead, tq, dm))
    xkv_b = jnp.broadcast_to(xkv, (nhead, Sk, dm))
    qh = jnp.einsum('hqd,hdf->hqf', xq_b, wq_ref[...],
                    preferred_element_type=jnp.float32).astype(jnp.bfloat16)
    kh = jnp.einsum('hkd,hdf->hkf', xkv_b, wk_ref[...],
                    preferred_element_type=jnp.float32).astype(jnp.bfloat16)
    vh = jnp.einsum('hkd,hdf->hkf', xkv_b, wv_ref[...],
                    preferred_element_type=jnp.float32).astype(jnp.bfloat16)

    # Scores for all heads in one batched matmul (f32).
    s = jnp.einsum('hqf,hkf->hqk', qh, kh, preferred_element_type=jnp.float32) * scale
    if causal:
        q0 = pl.program_id(1) * tq                   # row offset of this Sq tile
        rows = q0 + jax.lax.broadcasted_iota(jnp.int32, (nhead, tq, Sk), 1)
        cols = jax.lax.broadcasted_iota(jnp.int32, (nhead, tq, Sk), 2)
        s = jnp.where(cols <= rows, s, NEG_INF)

    # Stable softmax in f32; approximate reciprocal uses the EUP slot.
    s = s - jnp.max(s, axis=-1, keepdims=True)
    p = jnp.exp(s)
    p = p * pl.reciprocal(jnp.sum(p, axis=-1, keepdims=True), approx=True)

    # P @ V and the output projection as batched matmuls; sum over heads replaces the
    # concat(heads) @ Wo contraction.
    oh = jnp.einsum('hqk,hkf->hqf', p.astype(jnp.bfloat16), vh,
                    preferred_element_type=jnp.float32)               # (nhead, tq, dk)
    out = jnp.einsum('hqf,hfe->hqe', oh.astype(jnp.bfloat16), wo_ref[...],
                     preferred_element_type=jnp.float32)              # (nhead, tq, dm)
    out = jnp.sum(out, axis=0)                                        # (tq, dm) f32

    # Fused residual add + post-LayerNorm (f32 math), store bf16.
    y = out + xq.astype(jnp.float32)
    mu = jnp.mean(y, axis=-1, keepdims=True)
    var = jnp.mean((y - mu) * (y - mu), axis=-1, keepdims=True)
    o_ref[0] = ((y - mu) * jax.lax.rsqrt(var + EPS) * g_ref[...] + b_ref[...]
                ).astype(o_ref.dtype)


def pallas_mha_block(xq, xkv, wq3, wk3, wv3, wo3, gamma, beta, *, causal):
    """LN(xq + MHA(Q=xq@Wq, K/V=xkv@Wk/Wv) @ Wo).

    xq: (B, Sq, dm) bf16 (query source AND residual); xkv: (B, Sk, dm) bf16 (K/V source).
    wq3/wk3/wv3: (nhead, dm, dk) bf16; wo3: (nhead, dk, dm) bf16.  Output bf16.
    """
    B, Sq, dm = xq.shape
    _, Sk, _ = xkv.shape
    nhead, _, dk = wq3.shape
    scale = 1.0 / math.sqrt(dk)
    tq = _pick_tile(Sq, 256, 16)
    g = gamma.reshape(1, dm)
    b = beta.reshape(1, dm)
    kernel = functools.partial(_mha_block_kernel, scale=scale, causal=causal)
    return pl.pallas_call(
        kernel,
        out_shape=jax.ShapeDtypeStruct((B, Sq, dm), jnp.bfloat16),
        grid=(B, Sq // tq),
        in_specs=[pl.BlockSpec((1, tq, dm), lambda bi, qi: (bi, qi, 0)),
                  pl.BlockSpec((1, Sk, dm), lambda bi, qi: (bi, 0, 0)),
                  pl.BlockSpec((nhead, dm, dk), lambda bi, qi: (0, 0, 0)),
                  pl.BlockSpec((nhead, dm, dk), lambda bi, qi: (0, 0, 0)),
                  pl.BlockSpec((nhead, dm, dk), lambda bi, qi: (0, 0, 0)),
                  pl.BlockSpec((nhead, dk, dm), lambda bi, qi: (0, 0, 0)),
                  pl.BlockSpec((1, dm), lambda bi, qi: (0, 0)),
                  pl.BlockSpec((1, dm), lambda bi, qi: (0, 0))],
        out_specs=pl.BlockSpec((1, tq, dm), lambda bi, qi: (bi, qi, 0)),
        compiler_params=pltpu.CompilerParams(
            dimension_semantics=("parallel", "parallel"),
            vmem_limit_bytes=VMEM_LIMIT),
    )(xq, xkv, wq3, wk3, wv3, wo3, g, b)


# --------------------- fused FFN (ReLU) + residual Add&LayerNorm ---------------------

def _ffn_ln_kernel(x_ref, w1_ref, w2_ref, g_ref, b_ref, o_ref):
    x = x_ref[...]                                                       # (tm, D) bf16
    h = jnp.maximum(jnp.dot(x, w1_ref[...], preferred_element_type=jnp.float32), 0.0)
    f = jnp.dot(h.astype(jnp.bfloat16), w2_ref[...],
                preferred_element_type=jnp.float32)
    y = f + x.astype(jnp.float32)
    mu = jnp.mean(y, axis=-1, keepdims=True)
    var = jnp.mean((y - mu) * (y - mu), axis=-1, keepdims=True)
    o_ref[...] = ((y - mu) * jax.lax.rsqrt(var + EPS) * g_ref[...] + b_ref[...]
                  ).astype(o_ref.dtype)


def pallas_ffn_ln(x, w1, w2, gamma, beta):
    """Row-tiled: out = LN(x + relu(x @ w1) @ w2); bf16 weights stay resident in VMEM."""
    # TODO(synk): for very large dff on v7x (64 MiB VMEM), tile the F axis with an
    #             accumulating inner loop instead of keeping both weights fully resident.
    M, D = x.shape
    F = w1.shape[1]
    tm = _pick_tile(M, 512, 16)
    g = gamma.reshape(1, D)
    b = beta.reshape(1, D)
    return pl.pallas_call(
        _ffn_ln_kernel,
        out_shape=jax.ShapeDtypeStruct((M, D), jnp.bfloat16),
        grid=(M // tm,),
        in_specs=[pl.BlockSpec((tm, D), lambda i: (i, 0)),
                  pl.BlockSpec((D, F), lambda i: (0, 0)),
                  pl.BlockSpec((F, D), lambda i: (0, 0)),
                  pl.BlockSpec((1, D), lambda i: (0, 0)),
                  pl.BlockSpec((1, D), lambda i: (0, 0))],
        out_specs=pl.BlockSpec((tm, D), lambda i: (i, 0)),
        compiler_params=pltpu.CompilerParams(
            dimension_semantics=("parallel",),
            vmem_limit_bytes=VMEM_LIMIT),
    )(x, w1, w2, g, b)


# ----------------------------- Model (params + glue) -----------------------------

def xavier_uniform(key, shape):
    fan_in, fan_out = shape[1], shape[0]
    bound = math.sqrt(6.0 / (fan_in + fan_out))
    return jax.random.uniform(key, shape, jnp.float32, -bound, bound)


def sinusoidal_pe(maxlen, dm):
    pos = jnp.arange(maxlen, dtype=jnp.float32)[:, None]
    i = jnp.arange(dm, dtype=jnp.float32)[None, :]
    angle = pos / jnp.power(10000.0, (2.0 * jnp.floor(i / 2.0)) / dm)
    return jnp.where((jnp.arange(dm) % 2)[None, :] == 0, jnp.sin(angle), jnp.cos(angle))


def _split_wq(w, nhead):
    """(dm, dm) -> (nhead, dm, dk) bf16; head h holds columns h*dk:(h+1)*dk."""
    dm = w.shape[0]
    dk = dm // nhead
    return jnp.transpose(w.reshape(dm, nhead, dk), (1, 0, 2)).astype(jnp.bfloat16)


def _split_wo(w, nhead):
    """(dm, dm) -> (nhead, dk, dm) bf16; head h holds rows h*dk:(h+1)*dk."""
    dm = w.shape[0]
    dk = dm // nhead
    return w.reshape(nhead, dk, dm).astype(jnp.bfloat16)


def init_params(key, vocab_enc, vocab_dec, maxlen, dm, dff, layers, nhead):
    n_per_enc, n_per_dec = 6, 10
    n_keys = 2 + layers * (n_per_enc + n_per_dec)
    ks = list(jax.random.split(key, n_keys))

    emb_enc = xavier_uniform(ks.pop(), (vocab_enc, dm))
    emb_dec = xavier_uniform(ks.pop(), (vocab_dec, dm))
    vocab_pad = ((vocab_dec + 127) // 128) * 128
    unembed = jnp.pad(emb_dec, ((0, vocab_pad - vocab_dec), (0, 0))).astype(jnp.bfloat16)

    p = {
        "emb_enc": emb_enc,
        "emb_dec": emb_dec,
        "unembed": unembed,          # (vocab_pad, dm) bf16, lane-dense unembedding
        "pe": sinusoidal_pe(maxlen, dm),
        "enc_layers": [],
        "dec_layers": [],
    }
    ones, zeros = jnp.ones((dm,), jnp.float32), jnp.zeros((dm,), jnp.float32)

    def attn_weights():
        wq = xavier_uniform(ks.pop(), (dm, dm))
        wk = xavier_uniform(ks.pop(), (dm, dm))
        wv = xavier_uniform(ks.pop(), (dm, dm))
        wo = xavier_uniform(ks.pop(), (dm, dm))
        return (_split_wq(wq, nhead), _split_wq(wk, nhead),
                _split_wq(wv, nhead), _split_wo(wo, nhead))

    for _ in range(layers):
        wq3, wk3, wv3, wo3 = attn_weights()
        p["enc_layers"].append({
            "wq3": wq3, "wk3": wk3, "wv3": wv3, "wo3": wo3,
            "w1": xavier_uniform(ks.pop(), (dm, dff)).astype(jnp.bfloat16),
            "w2": xavier_uniform(ks.pop(), (dff, dm)).astype(jnp.bfloat16),
            "ln1_g": ones, "ln1_b": zeros, "ln2_g": ones, "ln2_b": zeros,
        })
    for _ in range(layers):
        s_wq3, s_wk3, s_wv3, s_wo3 = attn_weights()
        c_wq3, c_wk3, c_wv3, c_wo3 = attn_weights()
        p["dec_layers"].append({
            "self_wq3": s_wq3, "self_wk3": s_wk3, "self_wv3": s_wv3, "self_wo3": s_wo3,
            "cross_wq3": c_wq3, "cross_wk3": c_wk3, "cross_wv3": c_wv3, "cross_wo3": c_wo3,
            "w1": xavier_uniform(ks.pop(), (dm, dff)).astype(jnp.bfloat16),
            "w2": xavier_uniform(ks.pop(), (dff, dm)).astype(jnp.bfloat16),
            "ln1_g": ones, "ln1_b": zeros, "ln2_g": ones, "ln2_b": zeros,
            "ln3_g": ones, "ln3_b": zeros,
        })
    return p


def transformer_forward(params, src, tgt, dm, nhead):
    # TODO(synk): Encoder/Decoder internals are not shown in the reference; src_mask/tgt_mask
    #             default to None, so no padding mask is applied and the decoder
    #             self-attention uses the standard causal mask (generated in-kernel).
    #             Dropout = identity (eval mode).
    B, Ts = src.shape
    _, Tt = tgt.shape
    sqrt_dm = math.sqrt(dm)

    # ---- Encoder ----
    x = (params["emb_enc"][src] * sqrt_dm
         + params["pe"][:Ts][None, :, :]).astype(jnp.bfloat16)
    for lp in params["enc_layers"]:
        x = pallas_mha_block(x, x, lp["wq3"], lp["wk3"], lp["wv3"], lp["wo3"],
                             lp["ln1_g"], lp["ln1_b"], causal=False)
        x = pallas_ffn_ln(x.reshape(-1, dm), lp["w1"], lp["w2"],
                          lp["ln2_g"], lp["ln2_b"]).reshape(B, Ts, dm)
    e_out = x

    # ---- Decoder ----
    y = (params["emb_dec"][tgt] * sqrt_dm
         + params["pe"][:Tt][None, :, :]).astype(jnp.bfloat16)
    for lp in params["dec_layers"]:
        y = pallas_mha_block(y, y, lp["self_wq3"], lp["self_wk3"], lp["self_wv3"],
                             lp["self_wo3"], lp["ln1_g"], lp["ln1_b"], causal=True)
        y = pallas_mha_block(y, e_out, lp["cross_wq3"], lp["cross_wk3"], lp["cross_wv3"],
                             lp["cross_wo3"], lp["ln2_g"], lp["ln2_b"], causal=False)
        y = pallas_ffn_ln(y.reshape(-1, dm), lp["w1"], lp["w2"],
                          lp["ln3_g"], lp["ln3_b"]).reshape(B, Tt, dm)

    # ---- Tied unembedding: out = d_out @ emb_dec.T (vocab padded to 128 lanes) ----
    vocab_dec = params["emb_dec"].shape[0]
    logits = pallas_matmul_nt(y.reshape(-1, dm), params["unembed"])
    return logits[:, :vocab_dec].reshape(B, Tt, vocab_dec)


# ----------------------------- main -----------------------------

if __name__ == "__main__":
    vocab_enc, vocab_dec = 50, 60
    maxlen, pad_id = 16, 0
    dm, nhead, layers, dff = 32, 4, 2, 64
    B, Ts, Tt = 2, 8, 8

    key = jax.random.PRNGKey(0)
    k_src, k_tgt, k_param = jax.random.split(key, 3)
    src = jax.random.randint(k_src, (B, Ts), 0, vocab_enc, dtype=jnp.int32)
    tgt = jax.random.randint(k_tgt, (B, Tt), 0, vocab_dec, dtype=jnp.int32)

    params = init_params(k_param, vocab_enc, vocab_dec, maxlen, dm, dff, layers, nhead)

    fwd = jax.jit(functools.partial(transformer_forward, dm=dm, nhead=nhead))
    out = fwd(params, src, tgt)
    jax.block_until_ready(out)

    assert out.shape == (B, Tt, vocab_dec), out.shape
    assert out.dtype == jnp.float32
    assert bool(jnp.all(jnp.isfinite(out)))
    print("KERNEL_OK")
</pallas_src>

<mosaic_0001>
module attributes {stable_mosaic.version = 11 : i64} {
  func.func @_mha_block_kernel(%arg0: i32, %arg1: i32, %arg2: memref<1x8x32xbf16, #tpu.memory_space<vmem>>, %arg3: memref<1x8x32xbf16, #tpu.memory_space<vmem>>, %arg4: memref<4x32x8xbf16, #tpu.memory_space<vmem>>, %arg5: memref<4x32x8xbf16, #tpu.memory_space<vmem>>, %arg6: memref<4x32x8xbf16, #tpu.memory_space<vmem>>, %arg7: memref<4x8x32xbf16, #tpu.memory_space<vmem>>, %arg8: memref<1x32xf32, #tpu.memory_space<vmem>>, %arg9: memref<1x32xf32, #tpu.memory_space<vmem>>, %arg10: memref<1x8x32xbf16, #tpu.memory_space<vmem>>) attributes {dimension_semantics = [#tpu.dimension_semantics<parallel>, #tpu.dimension_semantics<parallel>], iteration_bounds = array<i64: 2, 1>, scalar_prefetch = 0 : i64, scratch_operands = 0 : i64, tpu.core_type = #tpu.core_type<tc>, window_params = [{transform_indices = @transform_0, window_bounds = array<i64: 1, 8, 32>}, {transform_indices = @transform_1, window_bounds = array<i64: 1, 8, 32>}, {pipeline_mode = #tpu.pipeline_mode<synchronous>, transform_indices = @transform_2, window_bounds = array<i64: 4, 32, 8>}, {pipeline_mode = #tpu.pipeline_mode<synchronous>, transform_indices = @transform_3, window_bounds = array<i64: 4, 32, 8>}, {pipeline_mode = #tpu.pipeline_mode<synchronous>, transform_indices = @transform_4, window_bounds = array<i64: 4, 32, 8>}, {pipeline_mode = #tpu.pipeline_mode<synchronous>, transform_indices = @transform_5, window_bounds = array<i64: 4, 8, 32>}, {pipeline_mode = #tpu.pipeline_mode<synchronous>, transform_indices = @transform_6, window_bounds = array<i64: 1, 32>}, {pipeline_mode = #tpu.pipeline_mode<synchronous>, transform_indices = @transform_7, window_bounds = array<i64: 1, 32>}, {transform_indices = @transform_8, window_bounds = array<i64: 1, 8, 32>}]} {
    %c0 = arith.constant 0 : index
    %c0_0 = arith.constant 0 : index
    %c0_1 = arith.constant 0 : index
    %0 = vector.load %arg2[%c0, %c0_0, %c0_1] : memref<1x8x32xbf16, #tpu.memory_space<vmem>>, vector<1x8x32xbf16>
    %1 = vector.shape_cast %0 : vector<1x8x32xbf16> to vector<8x32xbf16>
    %c0_2 = arith.constant 0 : index
    %c0_3 = arith.constant 0 : index
    %c0_4 = arith.constant 0 : index
    %2 = vector.load %arg3[%c0_2, %c0_3, %c0_4] : memref<1x8x32xbf16, #tpu.memory_space<vmem>>, vector<1x8x32xbf16>
    %3 = vector.shape_cast %2 : vector<1x8x32xbf16> to vector<8x32xbf16>
    %4 = vector.shape_cast %1 : vector<8x32xbf16> to vector<1x8x32xbf16>
    %5 = vector.broadcast %4 : vector<1x8x32xbf16> to vector<4x8x32xbf16>
    %6 = vector.shape_cast %3 : vector<8x32xbf16> to vector<1x8x32xbf16>
    %7 = vector.broadcast %6 : vector<1x8x32xbf16> to vector<4x8x32xbf16>
    %c0_5 = arith.constant 0 : index
    %c0_6 = arith.constant 0 : index
    %c0_7 = arith.constant 0 : index
    %8 = vector.load %arg4[%c0_5, %c0_6, %c0_7] : memref<4x32x8xbf16, #tpu.memory_space<vmem>>, vector<4x32x8xbf16>
    "tpu.trace_start"() <{level = 10 : i32, message = "hqd,hdf->hqf"}> : () -> ()
    %cst = arith.constant dense<0.000000e+00> : vector<4x8x8xf32>
    %9 = tpu.matmul %5, %8, %cst {dimension_numbers = #tpu.dot_dimension_numbers<[2], [1], [1], [2], [0, 0, 0, 1, 1, 2], [0], [0]>} : vector<4x8x32xbf16>, vector<4x32x8xbf16>, vector<4x8x8xf32> -> vector<4x8x8xf32>
    "tpu.trace_stop"() : () -> ()
    %10 = arith.truncf %9 : vector<4x8x8xf32> to vector<4x8x8xbf16>
    %c0_8 = arith.constant 0 : index
    %c0_9 = arith.constant 0 : index
    %c0_10 = arith.constant 0 : index
    %11 = vector.load %arg5[%c0_8, %c0_9, %c0_10] : memref<4x32x8xbf16, #tpu.memory_space<vmem>>, vector<4x32x8xbf16>
    "tpu.trace_start"() <{level = 10 : i32, message = "hkd,hdf->hkf"}> : () -> ()
    %cst_11 = arith.constant dense<0.000000e+00> : vector<4x8x8xf32>
    %12 = tpu.matmul %7, %11, %cst_11 {dimension_numbers = #tpu.dot_dimension_numbers<[2], [1], [1], [2], [0, 0, 0, 1, 1, 2], [0], [0]>} : vector<4x8x32xbf16>, vector<4x32x8xbf16>, vector<4x8x8xf32> -> vector<4x8x8xf32>
    "tpu.trace_stop"() : () -> ()
    %13 = arith.truncf %12 : vector<4x8x8xf32> to vector<4x8x8xbf16>
    %c0_12 = arith.constant 0 : index
    %c0_13 = arith.constant 0 : index
    %c0_14 = arith.constant 0 : index
    %14 = vector.load %arg6[%c0_12, %c0_13, %c0_14] : memref<4x32x8xbf16, #tpu.memory_space<vmem>>, vector<4x32x8xbf16>
    "tpu.trace_start"() <{level = 10 : i32, message = "hkd,hdf->hkf"}> : () -> ()
    %cst_15 = arith.constant dense<0.000000e+00> : vector<4x8x8xf32>
    %15 = tpu.matmul %7, %14, %cst_15 {dimension_numbers = #tpu.dot_dimension_numbers<[2], [1], [1], [2], [0, 0, 0, 1, 1, 2], [0], [0]>} : vector<4x8x32xbf16>, vector<4x32x8xbf16>, vector<4x8x8xf32> -> vector<4x8x8xf32>
    "tpu.trace_stop"() : () -> ()
    %16 = arith.truncf %15 : vector<4x8x8xf32> to vector<4x8x8xbf16>
    "tpu.trace_start"() <{level = 10 : i32, message = "hqf,hkf->hqk"}> : () -> ()
    %cst_16 = arith.constant dense<0.000000e+00> : vector<4x8x8xf32>
    %17 = tpu.matmul %10, %13, %cst_16 {dimension_numbers = #tpu.dot_dimension_numbers<[2], [2], [1], [1], [0, 0, 0, 1, 1, 1], [0], [0]>} : vector<4x8x8xbf16>, vector<4x8x8xbf16>, vector<4x8x8xf32> -> vector<4x8x8xf32>
    "tpu.trace_stop"() : () -> ()
    %cst_17 = arith.constant 0.353553385 : f32
    %18 = vector.broadcast %cst_17 : f32 to vector<4x8x8xf32>
    %19 = arith.mulf %17, %18 : vector<4x8x8xf32>
    %c8_i32 = arith.constant 8 : i32
    %20 = arith.muli %arg1, %c8_i32 : i32
    %21 = tpu.iota {dimensions = array<i32: 1>} : vector<4x8x8xi32>
    %22 = vector.broadcast %20 : i32 to vector<4x8x8xi32>
    %23 = arith.addi %22, %21 : vector<4x8x8xi32>
    %24 = tpu.iota {dimensions = array<i32: 2>} : vector<4x8x8xi32>
    %25 = arith.cmpi sle, %24, %23 : vector<4x8x8xi32>
    %cst_18 = arith.constant -1.000000e+09 : f32
    %26 = vector.broadcast %cst_18 : f32 to vector<4x8x8xf32>
    %27 = arith.select %25, %19, %26 : vector<4x8x8xi1>, vector<4x8x8xf32>
    %cst_19 = arith.constant dense<0xFF800000> : vector<4x8xf32>
    %28 = vector.multi_reduction <maximumf>, %27, %cst_19 [2] : vector<4x8x8xf32> to vector<4x8xf32>
    %29 = vector.shape_cast %28 : vector<4x8xf32> to vector<4x8x1xf32>
    %30 = vector.broadcast %29 : vector<4x8x1xf32> to vector<4x8x8xf32>
    %31 = arith.subf %27, %30 : vector<4x8x8xf32>
    %32 = math.exp %31 : vector<4x8x8xf32>
    %cst_20 = arith.constant dense<0.000000e+00> : vector<4x8xf32>
    %33 = vector.multi_reduction <add>, %32, %cst_20 [2] : vector<4x8x8xf32> to vector<4x8xf32>
    %34 = vector.shape_cast %33 : vector<4x8xf32> to vector<4x8x1xf32>
    %35 = tpu.reciprocal %34 {approx = true} : vector<4x8x1xf32> -> vector<4x8x1xf32>
    %36 = vector.broadcast %35 : vector<4x8x1xf32> to vector<4x8x8xf32>
    %37 = arith.mulf %32, %36 : vector<4x8x8xf32>
    %38 = arith.truncf %37 : vector<4x8x8xf32> to vector<4x8x8xbf16>
    "tpu.trace_start"() <{level = 10 : i32, message = "hqk,hkf->hqf"}> : () -> ()
    %cst_21 = arith.constant dense<0.000000e+00> : vector<4x8x8xf32>
    %39 = tpu.matmul %38, %16, %cst_21 {dimension_numbers = #tpu.dot_dimension_numbers<[2], [1], [1], [2], [0, 0, 0, 1, 1, 2], [0], [0]>} : vector<4x8x8xbf16>, vector<4x8x8xbf16>, vector<4x8x8xf32> -> vector<4x8x8xf32>
    "tpu.trace_stop"() : () -> ()
    %40 = arith.truncf %39 : vector<4x8x8xf32> to vector<4x8x8xbf16>
    %c0_22 = arith.constant 0 : index
    %c0_23 = arith.constant 0 : index
    %c0_24 = arith.constant 0 : index
    %41 = vector.load %arg7[%c0_22, %c0_23, %c0_24] : memref<4x8x32xbf16, #tpu.memory_space<vmem>>, vector<4x8x32xbf16>
    "tpu.trace_start"() <{level = 10 : i32, message = "hqf,hfe->hqe"}> : () -> ()
    %cst_25 = arith.constant dense<0.000000e+00> : vector<4x8x32xf32>
    %42 = tpu.matmul %40, %41, %cst_25 {dimension_numbers = #tpu.dot_dimension_numbers<[2], [1], [1], [2], [0, 0, 0, 1, 1, 2], [0], [0]>} : vector<4x8x8xbf16>, vector<4x8x32xbf16>, vector<4x8x32xf32> -> vector<4x8x32xf32>
    "tpu.trace_stop"() : () -> ()
    %cst_26 = arith.constant dense<0.000000e+00> : vector<8x32xf32>
    %43 = vector.multi_reduction <add>, %42, %cst_26 [0] : vector<4x8x32xf32> to vector<8x32xf32>
    %44 = arith.extf %1 : vector<8x32xbf16> to vector<8x32xf32>
    %45 = arith.addf %43, %44 : vector<8x32xf32>
    %cst_27 = arith.constant dense<0.000000e+00> : vector<8xf32>
    %46 = vector.multi_reduction <add>, %45, %cst_27 [1] : vector<8x32xf32> to vector<8xf32>
    %47 = vector.shape_cast %46 : vector<8xf32> to vector<8x1xf32>
    %cst_28 = arith.constant 3.200000e+01 : f32
    %48 = vector.broadcast %cst_28 : f32 to vector<8x1xf32>
    %49 = arith.divf %47, %48 : vector<8x1xf32>
    %50 = vector.broadcast %49 : vector<8x1xf32> to vector<8x32xf32>
    %51 = arith.subf %45, %50 : vector<8x32xf32>
    %52 = vector.broadcast %49 : vector<8x1xf32> to vector<8x32xf32>
    %53 = arith.subf %45, %52 : vector<8x32xf32>
    %54 = arith.mulf %51, %53 : vector<8x32xf32>
    %cst_29 = arith.constant dense<0.000000e+00> : vector<8xf32>
    %55 = vector.multi_reduction <add>, %54, %cst_29 [1] : vector<8x32xf32> to vector<8xf32>
    %56 = vector.shape_cast %55 : vector<8xf32> to vector<8x1xf32>
    %cst_30 = arith.constant 3.200000e+01 : f32
    %57 = vector.broadcast %cst_30 : f32 to vector<8x1xf32>
    %58 = arith.divf %56, %57 : vector<8x1xf32>
    %59 = vector.broadcast %49 : vector<8x1xf32> to vector<8x32xf32>
    %60 = arith.subf %45, %59 : vector<8x32xf32>
    %cst_31 = arith.constant 9.99999974E-6 : f32
    %61 = vector.broadcast %cst_31 : f32 to vector<8x1xf32>
    %62 = arith.addf %58, %61 : vector<8x1xf32>
    %63 = math.rsqrt %62 : vector<8x1xf32>
    %64 = vector.broadcast %63 : vector<8x1xf32> to vector<8x32xf32>
    %65 = arith.mulf %60, %64 : vector<8x32xf32>
    %c0_32 = arith.constant 0 : index
    %c0_33 = arith.constant 0 : index
    %66 = vector.load %arg8[%c0_32, %c0_33] : memref<1x32xf32, #tpu.memory_space<vmem>>, vector<1x32xf32>
    %67 = vector.broadcast %66 : vector<1x32xf32> to vector<8x32xf32>
    %68 = arith.mulf %65, %67 : vector<8x32xf32>
    %c0_34 = arith.constant 0 : index
    %c0_35 = arith.constant 0 : index
    %69 = vector.load %arg9[%c0_34, %c0_35] : memref<1x32xf32, #tpu.memory_space<vmem>>, vector<1x32xf32>
    %70 = vector.broadcast %69 : vector<1x32xf32> to vector<8x32xf32>
    %71 = arith.addf %68, %70 : vector<8x32xf32>
    %72 = arith.truncf %71 : vector<8x32xf32> to vector<8x32xbf16>
    %c0_36 = arith.constant 0 : index
    %c0_37 = arith.constant 0 : index
    %c0_38 = arith.constant 0 : index
    %73 = vector.load %arg10[%c0_36, %c0_37, %c0_38] : memref<1x8x32xbf16, #tpu.memory_space<vmem>>, vector<1x8x32xbf16>
    %74 = vector.shape_cast %73 : vector<1x8x32xbf16> to vector<8x32xbf16>
    %75 = vector.shape_cast %72 : vector<8x32xbf16> to vector<1x8x32xbf16>
    tpu.vector_store %arg10[%c0_36, %c0_37, %c0_38], %75 {strides = array<i32>} : memref<1x8x32xbf16, #tpu.memory_space<vmem>>, vector<1x8x32xbf16>,
    return
  }
  func.func @transform_0(%arg0: i32, %arg1: i32) -> (i32, i32, i32) {
    %c0_i32 = arith.constant 0 : i32
    %c0_i32_0 = arith.constant 0 : i32
    return %arg0, %arg1, %c0_i32 : i32, i32, i32
  }
  func.func @transform_1(%arg0: i32, %arg1: i32) -> (i32, i32, i32) {
    %c0_i32 = arith.constant 0 : i32
    %c0_i32_0 = arith.constant 0 : i32
    %c0_i32_1 = arith.constant 0 : i32
    return %arg0, %c0_i32, %c0_i32_0 : i32, i32, i32
  }
  func.func @transform_2(%arg0: i32, %arg1: i32) -> (i32, i32, i32) {
    %c0_i32 = arith.constant 0 : i32
    %c0_i32_0 = arith.constant 0 : i32
    %c0_i32_1 = arith.constant 0 : i32
    %c0_i32_2 = arith.constant 0 : i32
    return %c0_i32, %c0_i32_0, %c0_i32_1 : i32, i32, i32
  }
  func.func @transform_3(%arg0: i32, %arg1: i32) -> (i32, i32, i32) {
    %c0_i32 = arith.constant 0 : i32
    %c0_i32_0 = arith.constant 0 : i32
    %c0_i32_1 = arith.constant 0 : i32
    %c0_i32_2 = arith.constant 0 : i32
    return %c0_i32, %c0_i32_0, %c0_i32_1 : i32, i32, i32
  }
  func.func @transform_4(%arg0: i32, %arg1: i32) -> (i32, i32, i32) {
    %c0_i32 = arith.constant 0 : i32
    %c0_i32_0 = arith.constant 0 : i32
    %c0_i32_1 = arith.constant 0 : i32
    %c0_i32_2 = arith.constant 0 : i32
    return %c0_i32, %c0_i32_0, %c0_i32_1 : i32, i32, i32
  }
  func.func @transform_5(%arg0: i32, %arg1: i32) -> (i32, i32, i32) {
    %c0_i32 = arith.constant 0 : i32
    %c0_i32_0 = arith.constant 0 : i32
    %c0_i32_1 = arith.constant 0 : i32
    %c0_i32_2 = arith.constant 0 : i32
    return %c0_i32, %c0_i32_0, %c0_i32_1 : i32, i32, i32
  }
  func.func @transform_6(%arg0: i32, %arg1: i32) -> (i32, i32) {
    %c0_i32 = arith.constant 0 : i32
    %c0_i32_0 = arith.constant 0 : i32
    %c0_i32_1 = arith.constant 0 : i32
    return %c0_i32, %c0_i32_0 : i32, i32
  }
  func.func @transform_7(%arg0: i32, %arg1: i32) -> (i32, i32) {
    %c0_i32 = arith.constant 0 : i32
    %c0_i32_0 = arith.constant 0 : i32
    %c0_i32_1 = arith.constant 0 : i32
    return %c0_i32, %c0_i32_0 : i32, i32
  }
  func.func @transform_8(%arg0: i32, %arg1: i32) -> (i32, i32, i32) {
    %c0_i32 = arith.constant 0 : i32
    %c0_i32_0 = arith.constant 0 : i32
    return %arg0, %arg1, %c0_i32 : i32, i32, i32
  }
}

module attributes {stable_mosaic.version = 11 : i64} {
  func.func @_mha_block_kernel(%arg0: i32, %arg1: i32, %arg2: memref<1x8x32xbf16, #tpu.memory_space<vmem>>, %arg3: memref<1x8x32xbf16, #tpu.memory_space<vmem>>, %arg4: memref<4x32x8xbf16, #tpu.memory_space<vmem>>, %arg5: memref<4x32x8xbf16, #tpu.memory_space<vmem>>, %arg6: memref<4x32x8xbf16, #tpu.memory_space<vmem>>, %arg7: memref<4x8x32xbf16, #tpu.memory_space<vmem>>, %arg8: memref<1x32xf32, #tpu.memory_space<vmem>>, %arg9: memref<1x32xf32, #tpu.memory_space<vmem>>, %arg10: memref<1x8x32xbf16, #tpu.memory_space<vmem>>) attributes {dimension_semantics = [#tpu.dimension_semantics<parallel>, #tpu.dimension_semantics<parallel>], iteration_bounds = array<i64: 2, 1>, scalar_prefetch = 0 : i64, scratch_operands = 0 : i64, tpu.core_type = #tpu.core_type<tc>, window_params = [{transform_indices = @transform_0, window_bounds = array<i64: 1, 8, 32>}, {transform_indices = @transform_1, window_bounds = array<i64: 1, 8, 32>}, {pipeline_mode = #tpu.pipeline_mode<synchronous>, transform_indices = @transform_2, window_bounds = array<i64: 4, 32, 8>}, {pipeline_mode = #tpu.pipeline_mode<synchronous>, transform_indices = @transform_3, window_bounds = array<i64: 4, 32, 8>}, {pipeline_mode = #tpu.pipeline_mode<synchronous>, transform_indices = @transform_4, window_bounds = array<i64: 4, 32, 8>}, {pipeline_mode = #tpu.pipeline_mode<synchronous>, transform_indices = @transform_5, window_bounds = array<i64: 4, 8, 32>}, {pipeline_mode = #tpu.pipeline_mode<synchronous>, transform_indices = @transform_6, window_bounds = array<i64: 1, 32>}, {pipeline_mode = #tpu.pipeline_mode<synchronous>, transform_indices = @transform_7, window_bounds = array<i64: 1, 32>}, {transform_indices = @transform_8, window_bounds = array<i64: 1, 8, 32>}]} {
    %c0 = arith.constant 0 : index
    %c0_0 = arith.constant 0 : index
    %c0_1 = arith.constant 0 : index
    %0 = vector.load %arg2[%c0, %c0_0, %c0_1] : memref<1x8x32xbf16, #tpu.memory_space<vmem>>, vector<1x8x32xbf16>
    %1 = vector.shape_cast %0 : vector<1x8x32xbf16> to vector<8x32xbf16>
    %c0_2 = arith.constant 0 : index
    %c0_3 = arith.constant 0 : index
    %c0_4 = arith.constant 0 : index
    %2 = vector.load %arg3[%c0_2, %c0_3, %c0_4] : memref<1x8x32xbf16, #tpu.memory_space<vmem>>, vector<1x8x32xbf16>
    %3 = vector.shape_cast %2 : vector<1x8x32xbf16> to vector<8x32xbf16>
    %4 = vector.shape_cast %1 : vector<8x32xbf16> to vector<1x8x32xbf16>
    %5 = vector.broadcast %4 : vector<1x8x32xbf16> to vector<4x8x32xbf16>
    %6 = vector.shape_cast %3 : vector<8x32xbf16> to vector<1x8x32xbf16>
    %7 = vector.broadcast %6 : vector<1x8x32xbf16> to vector<4x8x32xbf16>
    %c0_5 = arith.constant 0 : index
    %c0_6 = arith.constant 0 : index
    %c0_7 = arith.constant 0 : index
    %8 = vector.load %arg4[%c0_5, %c0_6, %c0_7] : memref<4x32x8xbf16, #tpu.memory_space<vmem>>, vector<4x32x8xbf16>
    "tpu.trace_start"() <{level = 10 : i32, message = "hqd,hdf->hqf"}> : () -> ()
    %cst = arith.constant dense<0.000000e+00> : vector<4x8x8xf32>
    %9 = tpu.matmul %5, %8, %cst {dimension_numbers = #tpu.dot_dimension_numbers<[2], [1], [1], [2], [0, 0, 0, 1, 1, 2], [0], [0]>} : vector<4x8x32xbf16>, vector<4x32x8xbf16>, vector<4x8x8xf32> -> vector<4x8x8xf32>
    "tpu.trace_stop"() : () -> ()
    %10 = arith.truncf %9 : vector<4x8x8xf32> to vector<4x8x8xbf16>
    %c0_8 = arith.constant 0 : index
    %c0_9 = arith.constant 0 : index
    %c0_10 = arith.constant 0 : index
    %11 = vector.load %arg5[%c0_8, %c0_9, %c0_10] : memref<4x32x8xbf16, #tpu.memory_space<vmem>>, vector<4x32x8xbf16>
    "tpu.trace_start"() <{level = 10 : i32, message = "hkd,hdf->hkf"}> : () -> ()
    %cst_11 = arith.constant dense<0.000000e+00> : vector<4x8x8xf32>
    %12 = tpu.matmul %7, %11, %cst_11 {dimension_numbers = #tpu.dot_dimension_numbers<[2], [1], [1], [2], [0, 0, 0, 1, 1, 2], [0], [0]>} : vector<4x8x32xbf16>, vector<4x32x8xbf16>, vector<4x8x8xf32> -> vector<4x8x8xf32>
    "tpu.trace_stop"() : () -> ()
    %13 = arith.truncf %12 : vector<4x8x8xf32> to vector<4x8x8xbf16>
    %c0_12 = arith.constant 0 : index
    %c0_13 = arith.constant 0 : index
    %c0_14 = arith.constant 0 : index
    %14 = vector.load %arg6[%c0_12, %c0_13, %c0_14] : memref<4x32x8xbf16, #tpu.memory_space<vmem>>, vector<4x32x8xbf16>
    "tpu.trace_start"() <{level = 10 : i32, message = "hkd,hdf->hkf"}> : () -> ()
    %cst_15 = arith.constant dense<0.000000e+00> : vector<4x8x8xf32>
    %15 = tpu.matmul %7, %14, %cst_15 {dimension_numbers = #tpu.dot_dimension_numbers<[2], [1], [1], [2], [0, 0, 0, 1, 1, 2], [0], [0]>} : vector<4x8x32xbf16>, vector<4x32x8xbf16>, vector<4x8x8xf32> -> vector<4x8x8xf32>
    "tpu.trace_stop"() : () -> ()
    %16 = arith.truncf %15 : vector<4x8x8xf32> to vector<4x8x8xbf16>
    "tpu.trace_start"() <{level = 10 : i32, message = "hqf,hkf->hqk"}> : () -> ()
    %cst_16 = arith.constant dense<0.000000e+00> : vector<4x8x8xf32>
    %17 = tpu.matmul %10, %13, %cst_16 {dimension_numbers = #tpu.dot_dimension_numbers<[2], [2], [1], [1], [0, 0, 0, 1, 1, 1], [0], [0]>} : vector<4x8x8xbf16>, vector<4x8x8xbf16>, vector<4x8x8xf32> -> vector<4x8x8xf32>
    "tpu.trace_stop"() : () -> ()
    %cst_17 = arith.constant 0.353553385 : f32
    %18 = vector.broadcast %cst_17 : f32 to vector<4x8x8xf32>
    %19 = arith.mulf %17, %18 : vector<4x8x8xf32>
    %cst_18 = arith.constant dense<0xFF800000> : vector<4x8xf32>
    %20 = vector.multi_reduction <maximumf>, %19, %cst_18 [2] : vector<4x8x8xf32> to vector<4x8xf32>
    %21 = vector.shape_cast %20 : vector<4x8xf32> to vector<4x8x1xf32>
    %22 = vector.broadcast %21 : vector<4x8x1xf32> to vector<4x8x8xf32>
    %23 = arith.subf %19, %22 : vector<4x8x8xf32>
    %24 = math.exp %23 : vector<4x8x8xf32>
    %cst_19 = arith.constant dense<0.000000e+00> : vector<4x8xf32>
    %25 = vector.multi_reduction <add>, %24, %cst_19 [2] : vector<4x8x8xf32> to vector<4x8xf32>
    %26 = vector.shape_cast %25 : vector<4x8xf32> to vector<4x8x1xf32>
    %27 = tpu.reciprocal %26 {approx = true} : vector<4x8x1xf32> -> vector<4x8x1xf32>
    %28 = vector.broadcast %27 : vector<4x8x1xf32> to vector<4x8x8xf32>
    %29 = arith.mulf %24, %28 : vector<4x8x8xf32>
    %30 = arith.truncf %29 : vector<4x8x8xf32> to vector<4x8x8xbf16>
    "tpu.trace_start"() <{level = 10 : i32, message = "hqk,hkf->hqf"}> : () -> ()
    %cst_20 = arith.constant dense<0.000000e+00> : vector<4x8x8xf32>
    %31 = tpu.matmul %30, %16, %cst_20 {dimension_numbers = #tpu.dot_dimension_numbers<[2], [1], [1], [2], [0, 0, 0, 1, 1, 2], [0], [0]>} : vector<4x8x8xbf16>, vector<4x8x8xbf16>, vector<4x8x8xf32> -> vector<4x8x8xf32>
    "tpu.trace_stop"() : () -> ()
    %32 = arith.truncf %31 : vector<4x8x8xf32> to vector<4x8x8xbf16>
    %c0_21 = arith.constant 0 : index
    %c0_22 = arith.constant 0 : index
    %c0_23 = arith.constant 0 : index
    %33 = vector.load %arg7[%c0_21, %c0_22, %c0_23] : memref<4x8x32xbf16, #tpu.memory_space<vmem>>, vector<4x8x32xbf16>
    "tpu.trace_start"() <{level = 10 : i32, message = "hqf,hfe->hqe"}> : () -> ()
    %cst_24 = arith.constant dense<0.000000e+00> : vector<4x8x32xf32>
    %34 = tpu.matmul %32, %33, %cst_24 {dimension_numbers = #tpu.dot_dimension_numbers<[2], [1], [1], [2], [0, 0, 0, 1, 1, 2], [0], [0]>} : vector<4x8x8xbf16>, vector<4x8x32xbf16>, vector<4x8x32xf32> -> vector<4x8x32xf32>
    "tpu.trace_stop"() : () -> ()
    %cst_25 = arith.constant dense<0.000000e+00> : vector<8x32xf32>
    %35 = vector.multi_reduction <add>, %34, %cst_25 [0] : vector<4x8x32xf32> to vector<8x32xf32>
    %36 = arith.extf %1 : vector<8x32xbf16> to vector<8x32xf32>
    %37 = arith.addf %35, %36 : vector<8x32xf32>
    %cst_26 = arith.constant dense<0.000000e+00> : vector<8xf32>
    %38 = vector.multi_reduction <add>, %37, %cst_26 [1] : vector<8x32xf32> to vector<8xf32>
    %39 = vector.shape_cast %38 : vector<8xf32> to vector<8x1xf32>
    %cst_27 = arith.constant 3.200000e+01 : f32
    %40 = vector.broadcast %cst_27 : f32 to vector<8x1xf32>
    %41 = arith.divf %39, %40 : vector<8x1xf32>
    %42 = vector.broadcast %41 : vector<8x1xf32> to vector<8x32xf32>
    %43 = arith.subf %37, %42 : vector<8x32xf32>
    %44 = vector.broadcast %41 : vector<8x1xf32> to vector<8x32xf32>
    %45 = arith.subf %37, %44 : vector<8x32xf32>
    %46 = arith.mulf %43, %45 : vector<8x32xf32>
    %cst_28 = arith.constant dense<0.000000e+00> : vector<8xf32>
    %47 = vector.multi_reduction <add>, %46, %cst_28 [1] : vector<8x32xf32> to vector<8xf32>
    %48 = vector.shape_cast %47 : vector<8xf32> to vector<8x1xf32>
    %cst_29 = arith.constant 3.200000e+01 : f32
    %49 = vector.broadcast %cst_29 : f32 to vector<8x1xf32>
    %50 = arith.divf %48, %49 : vector<8x1xf32>
    %51 = vector.broadcast %41 : vector<8x1xf32> to vector<8x32xf32>
    %52 = arith.subf %37, %51 : vector<8x32xf32>
    %cst_30 = arith.constant 9.99999974E-6 : f32
    %53 = vector.broadcast %cst_30 : f32 to vector<8x1xf32>
    %54 = arith.addf %50, %53 : vector<8x1xf32>
    %55 = math.rsqrt %54 : vector<8x1xf32>
    %56 = vector.broadcast %55 : vector<8x1xf32> to vector<8x32xf32>
    %57 = arith.mulf %52, %56 : vector<8x32xf32>
    %c0_31 = arith.constant 0 : index
    %c0_32 = arith.constant 0 : index
    %58 = vector.load %arg8[%c0_31, %c0_32] : memref<1x32xf32, #tpu.memory_space<vmem>>, vector<1x32xf32>
    %59 = vector.broadcast %58 : vector<1x32xf32> to vector<8x32xf32>
    %60 = arith.mulf %57, %59 : vector<8x32xf32>
    %c0_33 = arith.constant 0 : index
    %c0_34 = arith.constant 0 : index
    %61 = vector.load %arg9[%c0_33, %c0_34] : memref<1x32xf32, #tpu.memory_space<vmem>>, vector<1x32xf32>
    %62 = vector.broadcast %61 : vector<1x32xf32> to vector<8x32xf32>
    %63 = arith.addf %60, %62 : vector<8x32xf32>
    %64 = arith.truncf %63 : vector<8x32xf32> to vector<8x32xbf16>
    %c0_35 = arith.constant 0 : index
    %c0_36 = arith.constant 0 : index
    %c0_37 = arith.constant 0 : index
    %65 = vector.load %arg10[%c0_35, %c0_36, %c0_37] : memref<1x8x32xbf16, #tpu.memory_space<vmem>>, vector<1x8x32xbf16>
    %66 = vector.shape_cast %65 : vector<1x8x32xbf16> to vector<8x32xbf16>
    %67 = vector.shape_cast %64 : vector<8x32xbf16> to vector<1x8x32xbf16>
    tpu.vector_store %arg10[%c0_35, %c0_36, %c0_37], %67 {strides = array<i32>} : memref<1x8x32xbf16, #tpu.memory_space<vmem>>, vector<1x8x32xbf16>,
    return
  }
  func.func @transform_0(%arg0: i32, %arg1: i32) -> (i32, i32, i32) {
    %c0_i32 = arith.constant 0 : i32
    %c0_i32_0 = arith.constant 0 : i32
    return %arg0, %arg1, %c0_i32 : i32, i32, i32
  }
  func.func @transform_1(%arg0: i32, %arg1: i32) -> (i32, i32, i32) {
    %c0_i32 = arith.constant 0 : i32
    %c0_i32_0 = arith.constant 0 : i32
    %c0_i32_1 = arith.constant 0 : i32
    return %arg0, %c0_i32, %c0_i32_0 : i32, i32, i32
  }
  func.func @transform_2(%arg0: i32, %arg1: i32) -> (i32, i32, i32) {
    %c0_i32 = arith.constant 0 : i32
    %c0_i32_0 = arith.constant 0 : i32
    %c0_i32_1 = arith.constant 0 : i32
    %c0_i32_2 = arith.constant 0 : i32
    return %c0_i32, %c0_i32_0, %c0_i32_1 : i32, i32, i32
  }
  func.func @transform_3(%arg0: i32, %arg1: i32) -> (i32, i32, i32) {
    %c0_i32 = arith.constant 0 : i32
    %c0_i32_0 = arith.constant 0 : i32
    %c0_i32_1 = arith.constant 0 : i32
    %c0_i32_2 = arith.constant 0 : i32
    return %c0_i32, %c0_i32_0, %c0_i32_1 : i32, i32, i32
  }
  func.func @transform_4(%arg0: i32, %arg1: i32) -> (i32, i32, i32) {
    %c0_i32 = arith.constant 0 : i32
    %c0_i32_0 = arith.constant 0 : i32
    %c0_i32_1 = arith.constant 0 : i32
    %c0_i32_2 = arith.constant 0 : i32
    return %c0_i32, %c0_i32_0, %c0_i32_1 : i32, i32, i32
  }
  func.func @transform_5(%arg0: i32, %arg1: i32) -> (i32, i32, i32) {
    %c0_i32 = arith.constant 0 : i32
    %c0_i32_0 = arith.constant 0 : i32
    %c0_i32_1 = arith.constant 0 : i32
    %c0_i32_2 = arith.constant 0 : i32
    return %c0_i32, %c0_i32_0, %c0_i32_1 : i32, i32, i32
  }
  func.func @transform_6(%arg0: i32, %arg1: i32) -> (i32, i32) {
    %c0_i32 = arith.constant 0 : i32
    %c0_i32_0 = arith.constant 0 : i32
    %c0_i32_1 = arith.constant 0 : i32
    return %c0_i32, %c0_i32_0 : i32, i32
  }
  func.func @transform_7(%arg0: i32, %arg1: i32) -> (i32, i32) {
    %c0_i32 = arith.constant 0 : i32
    %c0_i32_0 = arith.constant 0 : i32
    %c0_i32_1 = arith.constant 0 : i32
    return %c0_i32, %c0_i32_0 : i32, i32
  }
  func.func @transform_8(%arg0: i32, %arg1: i32) -> (i32, i32, i32) {
    %c0_i32 = arith.constant 0 : i32
    %c0_i32_0 = arith.constant 0 : i32
    return %arg0, %arg1, %c0_i32 : i32, i32, i32
  }
}

module attributes {stable_mosaic.version = 11 : i64} {
  func.func @_ffn_ln_kernel(%arg0: i32, %arg1: memref<16x32xbf16, #tpu.memory_space<vmem>>, %arg2: memref<32x64xbf16, #tpu.memory_space<vmem>>, %arg3: memref<64x32xbf16, #tpu.memory_space<vmem>>, %arg4: memref<1x32xf32, #tpu.memory_space<vmem>>, %arg5: memref<1x32xf32, #tpu.memory_space<vmem>>, %arg6: memref<16x32xbf16, #tpu.memory_space<vmem>>) attributes {dimension_semantics = [#tpu.dimension_semantics<parallel>], iteration_bounds = array<i64: 1>, scalar_prefetch = 0 : i64, scratch_operands = 0 : i64, tpu.core_type = #tpu.core_type<tc>, window_params = [{transform_indices = @transform_0, window_bounds = array<i64: 16, 32>}, {pipeline_mode = #tpu.pipeline_mode<synchronous>, transform_indices = @transform_1, window_bounds = array<i64: 32, 64>}, {pipeline_mode = #tpu.pipeline_mode<synchronous>, transform_indices = @transform_2, window_bounds = array<i64: 64, 32>}, {pipeline_mode = #tpu.pipeline_mode<synchronous>, transform_indices = @transform_3, window_bounds = array<i64: 1, 32>}, {pipeline_mode = #tpu.pipeline_mode<synchronous>, transform_indices = @transform_4, window_bounds = array<i64: 1, 32>}, {transform_indices = @transform_5, window_bounds = array<i64: 16, 32>}]} {
    %c0 = arith.constant 0 : index
    %c0_0 = arith.constant 0 : index
    %0 = vector.load %arg1[%c0, %c0_0] : memref<16x32xbf16, #tpu.memory_space<vmem>>, vector<16x32xbf16>
    %c0_1 = arith.constant 0 : index
    %c0_2 = arith.constant 0 : index
    %1 = vector.load %arg2[%c0_1, %c0_2] : memref<32x64xbf16, #tpu.memory_space<vmem>>, vector<32x64xbf16>
    %cst = arith.constant dense<0.000000e+00> : vector<16x64xf32>
    %2 = tpu.matmul %0, %1, %cst {dimension_numbers = #tpu.dot_dimension_numbers<[1], [0], [0], [1], [0, 0, 1, 1], [], []>} : vector<16x32xbf16>, vector<32x64xbf16>, vector<16x64xf32> -> vector<16x64xf32>
    %cst_3 = arith.constant 0.000000e+00 : f32
    %3 = vector.broadcast %cst_3 : f32 to vector<16x64xf32>
    %4 = arith.maximumf %2, %3 : vector<16x64xf32>
    %5 = arith.truncf %4 : vector<16x64xf32> to vector<16x64xbf16>
    %c0_4 = arith.constant 0 : index
    %c0_5 = arith.constant 0 : index
    %6 = vector.load %arg3[%c0_4, %c0_5] : memref<64x32xbf16, #tpu.memory_space<vmem>>, vector<64x32xbf16>
    %cst_6 = arith.constant dense<0.000000e+00> : vector<16x32xf32>
    %7 = tpu.matmul %5, %6, %cst_6 {dimension_numbers = #tpu.dot_dimension_numbers<[1], [0], [0], [1], [0, 0, 1, 1], [], []>} : vector<16x64xbf16>, vector<64x32xbf16>, vector<16x32xf32> -> vector<16x32xf32>
    %8 = arith.extf %0 : vector<16x32xbf16> to vector<16x32xf32>
    %9 = arith.addf %7, %8 : vector<16x32xf32>
    %cst_7 = arith.constant dense<0.000000e+00> : vector<16xf32>
    %10 = vector.multi_reduction <add>, %9, %cst_7 [1] : vector<16x32xf32> to vector<16xf32>
    %11 = vector.shape_cast %10 : vector<16xf32> to vector<16x1xf32>
    %cst_8 = arith.constant 3.200000e+01 : f32
    %12 = vector.broadcast %cst_8 : f32 to vector<16x1xf32>
    %13 = arith.divf %11, %12 : vector<16x1xf32>
    %14 = vector.broadcast %13 : vector<16x1xf32> to vector<16x32xf32>
    %15 = arith.subf %9, %14 : vector<16x32xf32>
    %16 = vector.broadcast %13 : vector<16x1xf32> to vector<16x32xf32>
    %17 = arith.subf %9, %16 : vector<16x32xf32>
    %18 = arith.mulf %15, %17 : vector<16x32xf32>
    %cst_9 = arith.constant dense<0.000000e+00> : vector<16xf32>
    %19 = vector.multi_reduction <add>, %18, %cst_9 [1] : vector<16x32xf32> to vector<16xf32>
    %20 = vector.shape_cast %19 : vector<16xf32> to vector<16x1xf32>
    %cst_10 = arith.constant 3.200000e+01 : f32
    %21 = vector.broadcast %cst_10 : f32 to vector<16x1xf32>
    %22 = arith.divf %20, %21 : vector<16x1xf32>
    %23 = vector.broadcast %13 : vector<16x1xf32> to vector<16x32xf32>
    %24 = arith.subf %9, %23 : vector<16x32xf32>
    %cst_11 = arith.constant 9.99999974E-6 : f32
    %25 = vector.broadcast %cst_11 : f32 to vector<16x1xf32>
    %26 = arith.addf %22, %25 : vector<16x1xf32>
    %27 = math.rsqrt %26 : vector<16x1xf32>
    %28 = vector.broadcast %27 : vector<16x1xf32> to vector<16x32xf32>
    %29 = arith.mulf %24, %28 : vector<16x32xf32>
    %c0_12 = arith.constant 0 : index
    %c0_13 = arith.constant 0 : index
    %30 = vector.load %arg4[%c0_12, %c0_13] : memref<1x32xf32, #tpu.memory_space<vmem>>, vector<1x32xf32>
    %31 = vector.broadcast %30 : vector<1x32xf32> to vector<16x32xf32>
    %32 = arith.mulf %29, %31 : vector<16x32xf32>
    %c0_14 = arith.constant 0 : index
    %c0_15 = arith.constant 0 : index
    %33 = vector.load %arg5[%c0_14, %c0_15] : memref<1x32xf32, #tpu.memory_space<vmem>>, vector<1x32xf32>
    %34 = vector.broadcast %33 : vector<1x32xf32> to vector<16x32xf32>
    %35 = arith.addf %32, %34 : vector<16x32xf32>
    %36 = arith.truncf %35 : vector<16x32xf32> to vector<16x32xbf16>
    %c0_16 = arith.constant 0 : index
    %c0_17 = arith.constant 0 : index
    %37 = vector.load %arg6[%c0_16, %c0_17] : memref<16x32xbf16, #tpu.memory_space<vmem>>, vector<16x32xbf16>
    tpu.vector_store %arg6[%c0_16, %c0_17], %36 {strides = array<i32>} : memref<16x32xbf16, #tpu.memory_space<vmem>>, vector<16x32xbf16>,
    return
  }
  func.func @transform_0(%arg0: i32) -> (i32, i32) {
    %c0_i32 = arith.constant 0 : i32
    %c0_i32_0 = arith.constant 0 : i32
    return %arg0, %c0_i32 : i32, i32
  }
  func.func @transform_1(%arg0: i32) -> (i32, i32) {
    %c0_i32 = arith.constant 0 : i32
    %c0_i32_0 = arith.constant 0 : i32
    %c0_i32_1 = arith.constant 0 : i32
    return %c0_i32, %c0_i32_0 : i32, i32
  }
  func.func @transform_2(%arg0: i32) -> (i32, i32) {
    %c0_i32 = arith.constant 0 : i32
    %c0_i32_0 = arith.constant 0 : i32
    %c0_i32_1 = arith.constant 0 : i32
    return %c0_i32, %c0_i32_0 : i32, i32
  }
  func.func @transform_3(%arg0: i32) -> (i32, i32) {
    %c0_i32 = arith.constant 0 : i32
    %c0_i32_0 = arith.constant 0 : i32
    %c0_i32_1 = arith.constant 0 : i32
    return %c0_i32, %c0_i32_0 : i32, i32
  }
  func.func @transform_4(%arg0: i32) -> (i32, i32) {
    %c0_i32 = arith.constant 0 : i32
    %c0_i32_0 = arith.constant 0 : i32
    %c0_i32_1 = arith.constant 0 : i32
    return %c0_i32, %c0_i32_0 : i32, i32
  }
  func.func @transform_5(%arg0: i32) -> (i32, i32) {
    %c0_i32 = arith.constant 0 : i32
    %c0_i32_0 = arith.constant 0 : i32
    return %arg0, %c0_i32 : i32, i32
  }
}

module attributes {stable_mosaic.version = 11 : i64} {
  func.func @_mm_nt_kernel(%arg0: i32, %arg1: i32, %arg2: i32, %arg3: memref<16x32xbf16, #tpu.memory_space<vmem>>, %arg4: memref<128x32xbf16, #tpu.memory_space<vmem>>, %arg5: memref<16x128xf32, #tpu.memory_space<vmem>>, %arg6: memref<16x128xf32, #tpu.memory_space<vmem>>) attributes {dimension_semantics = [#tpu.dimension_semantics<parallel>, #tpu.dimension_semantics<parallel>, #tpu.dimension_semantics<arbitrary>], iteration_bounds = array<i64: 1, 1, 1>, scalar_prefetch = 0 : i64, scratch_operands = 1 : i64, tpu.core_type = #tpu.core_type<tc>, window_params = [{transform_indices = @transform_0, window_bounds = array<i64: 16, 32>}, {transform_indices = @transform_1, window_bounds = array<i64: 128, 32>}, {transform_indices = @transform_2, window_bounds = array<i64: 16, 128>}]} {
    %c0_i32 = arith.constant 0 : i32
    %0 = arith.cmpi eq, %arg2, %c0_i32 : i32
    %1 = arith.extui %0 : i1 to i32
    %c0_i32_0 = arith.constant 0 : i32
    %2 = arith.cmpi ne, %1, %c0_i32_0 : i32
    scf.if %2 {
      %cst_10 = arith.constant 0.000000e+00 : f32
      %12 = vector.broadcast %cst_10 : f32 to vector<16x128xf32>
      %c0_11 = arith.constant 0 : index
      %c0_12 = arith.constant 0 : index
      %13 = vector.load %arg6[%c0_11, %c0_12] : memref<16x128xf32, #tpu.memory_space<vmem>>, vector<16x128xf32>
      tpu.vector_store %arg6[%c0_11, %c0_12], %12 {strides = array<i32>} : memref<16x128xf32, #tpu.memory_space<vmem>>, vector<16x128xf32>,
    } else {
    }
    %c0 = arith.constant 0 : index
    %c0_1 = arith.constant 0 : index
    %3 = vector.load %arg6[%c0, %c0_1] : memref<16x128xf32, #tpu.memory_space<vmem>>, vector<16x128xf32>
    %c0_2 = arith.constant 0 : index
    %c0_3 = arith.constant 0 : index
    %4 = vector.load %arg3[%c0_2, %c0_3] : memref<16x32xbf16, #tpu.memory_space<vmem>>, vector<16x32xbf16>
    %c0_4 = arith.constant 0 : index
    %c0_5 = arith.constant 0 : index
    %5 = vector.load %arg4[%c0_4, %c0_5] : memref<128x32xbf16, #tpu.memory_space<vmem>>, vector<128x32xbf16>
    %cst = arith.constant dense<0.000000e+00> : vector<16x128xf32>
    %6 = tpu.matmul %4, %5, %cst {dimension_numbers = #tpu.dot_dimension_numbers<[1], [1], [0], [0], [0, 0, 1, 0], [], []>} : vector<16x32xbf16>, vector<128x32xbf16>, vector<16x128xf32> -> vector<16x128xf32>
    %7 = arith.addf %3, %6 : vector<16x128xf32>
    %c0_6 = arith.constant 0 : index
    %c0_7 = arith.constant 0 : index
    %8 = vector.load %arg6[%c0_6, %c0_7] : memref<16x128xf32, #tpu.memory_space<vmem>>, vector<16x128xf32>
    tpu.vector_store %arg6[%c0_6, %c0_7], %7 {strides = array<i32>} : memref<16x128xf32, #tpu.memory_space<vmem>>, vector<16x128xf32>,
    %c0_i32_8 = arith.constant 0 : i32
    %9 = arith.cmpi eq, %arg2, %c0_i32_8 : i32
    %10 = arith.extui %9 : i1 to i32
    %c0_i32_9 = arith.constant 0 : i32
    %11 = arith.cmpi ne, %10, %c0_i32_9 : i32
    scf.if %11 {
      %c0_10 = arith.constant 0 : index
      %c0_11 = arith.constant 0 : index
      %12 = vector.load %arg6[%c0_10, %c0_11] : memref<16x128xf32, #tpu.memory_space<vmem>>, vector<16x128xf32>
      %c0_12 = arith.constant 0 : index
      %c0_13 = arith.constant 0 : index
      %13 = vector.load %arg5[%c0_12, %c0_13] : memref<16x128xf32, #tpu.memory_space<vmem>>, vector<16x128xf32>
      tpu.vector_store %arg5[%c0_12, %c0_13], %12 {strides = array<i32>} : memref<16x128xf32, #tpu.memory_space<vmem>>, vector<16x128xf32>,
    } else {
    }
    return
  }
  func.func @transform_0(%arg0: i32, %arg1: i32, %arg2: i32) -> (i32, i32) {
    %c0_i32 = arith.constant 0 : i32
    return %arg0, %arg2 : i32, i32
  }
  func.func @transform_1(%arg0: i32, %arg1: i32, %arg2: i32) -> (i32, i32) {
    %c0_i32 = arith.constant 0 : i32
    return %arg1, %arg2 : i32, i32
  }
  func.func @transform_2(%arg0: i32, %arg1: i32, %arg2: i32) -> (i32, i32) {
    %c0_i32 = arith.constant 0 : i32
    return %arg0, %arg1 : i32, i32
  }
}

</mosaic_0001>

<bundles_post_ra>
// kernel: transformer_forward.21
= control target key start
LH: loop header
LB: loop body
LE: loop exit
PB: predicated region body
PF: predicated region fallthrough
CT: control target
= control target key end

     0   :  { %vm83_vm0 = vcmask 261120   ;;  %v217_v0 = vmov 0.0   ;;  %vm218_vm1 = vmmov 0   ;;  %s276_s1 = inlined_call_operand.vmem [shape: bf16[128,32], index: 1, kind: input, shape index: {}]   ;;  %s277_s0 = inlined_call_operand.vmem [shape: bf16[16,32], index: 0, kind: input, shape index: {}]   ;;  %s278_s2 = inlined_call_operand.vmem [shape: f32[16,128], index: 2, kind: output, shape index: {}]  }
   0x1   :  { %186 = vmatprep.subr.bf16.mxu0 %v217_v0  ;;  %v208_v1 = vld [vmem:[%s276_s1 + $0x38] sm:$0xff]   ;;  %202 = vmatprep.mubr.msk.bf16.mxu0 %vm218_vm1, %v217_v0  ;;  %v209_v3 = vld [vmem:[%s276_s1 + $0x30] sm:$0xff]   ;;  %v210_v5 = vld [vmem:[%s276_s1 + $0x28] sm:$0xff]  }
   0x2   :  { %v109_v2 = vsel %vm83_vm0, %v208_v1, 0  ;;  %v106_v4 = vsel %vm83_vm0, %v209_v3, 0  ;;  %v103_v6 = vsel %vm83_vm0, %v210_v5, 0  ;;  %v211_v7 = vld [vmem:[%s276_s1 + $0x20] sm:$0xff]   ;;  %v212_v9 = vld [vmem:[%s276_s1 + $0x18] sm:$0xff]   ;;  %v213_v11 = vld [vmem:[%s276_s1 + $0x10] sm:$0xff]  }
   0x3   :  { %187 = vmatpush3.bf16.xpose.msra.mxu0 %v109_v2  ;;  %v100_v8 = vsel %vm83_vm0, %v211_v7, 0  ;;  %v97_v10 = vsel %vm83_vm0, %v212_v9, 0  ;;  %v94_v12 = vsel %vm83_vm0, %v213_v11, 0  ;;  %v214_v13 = vld [vmem:[%s276_s1 + $0x8] sm:$0xff]   ;;  %v215_v15 = vld [vmem:[%s276_s1] sm:$0xff]  }
   0x4   :  { %188 = vmatprep.subr.bf16.mxu0 %v217_v0  ;;  %v91_v14 = vsel %vm83_vm0, %v214_v13, 0  ;;  %v88_v16 = vsel %vm83_vm0, %v215_v15, 0  ;;  %v216_v17 = vld [vmem:[%s277_s0] sm:$0xff]  }
   0xb   :  { %189 = vmatpush3.bf16.xpose.msra.mxu0 %v106_v4 }
   0xc   :  { %190 = vmatprep.subr.bf16.mxu0 %v217_v0 }
  0x13   :  { %191 = vmatpush3.bf16.xpose.msra.mxu0 %v103_v6 }
  0x14   :  { %192 = vmatprep.subr.bf16.mxu0 %v217_v0 }
  0x1b   :  { %193 = vmatpush3.bf16.xpose.msra.mxu0 %v100_v8 }
  0x1c   :  { %194 = vmatprep.subr.bf16.mxu0 %v217_v0 }
  0x23   :  { %195 = vmatpush3.bf16.xpose.msra.mxu0 %v97_v10 }
  0x24   :  { %196 = vmatprep.subr.bf16.mxu0 %v217_v0 }
  0x2b   :  { %197 = vmatpush3.bf16.xpose.msra.mxu0 %v94_v12 }
  0x2c   :  { %198 = vmatprep.subr.bf16.mxu0 %v217_v0 }
  0x33   :  { %199 = vmatpush3.bf16.xpose.msra.mxu0 %v91_v14 }
  0x34   :  { %200 = vmatprep.subr.bf16.mxu0 %v217_v0 }
  0x3b   :  { %201 = vmatpush3.bf16.xpose.msra.mxu0 %v88_v16 }
  0x42   :  { %203 = vmatmul.mubr.msk.bf16.vlgmr.msra.gmra.mxu0 %vm83_vm0, %v216_v17 }
 0x102   :  { %v145_v18 = vpop.f32.mrf.mxu0 }
 0x103   :  { %161 = vst [vmem:[%s278_s2] sm:$0xff] %v145_v18 }
 0x104   :  { %v204_v19 = vpop.f32.mrf.mxu0 }
 0x106   :  { %v148_v20 = vpop.f32.mrf.mxu0 }
 0x107   :  { %162 = vst [vmem:[%s278_s2 + $0x8] sm:$0xff] %v148_v20 }
 0x108   :  { %v205_v21 = vpop.f32.mrf.mxu0 }

// kernel: transformer_forward.12
= control target key start
LH: loop header
LB: loop body
LE: loop exit
PB: predicated region body
PF: predicated region fallthrough
CT: control target
= control target key end

     0   :  { %v288_v0 = vmov 0.0   ;;  %vm289_vm0 = vmmov 0   ;;  %vm44_vm1 = vcmask 261120   ;;  %vm126_vm2 = vcmask 523264   ;;  %s358_s1 = inlined_call_operand.vmem [shape: bf16[32,64], index: 1, kind: input, shape index: {}]   ;;  %s359_s0 = inlined_call_operand.vmem [shape: bf16[16,32], index: 0, kind: input, shape index: {}]   ;;  %s360_s2 = inlined_call_operand.vmem [shape: bf16[64,32], index: 2, kind: input, shape index: {}]   ;;  %s361_s3 = inlined_call_operand.vmem [shape: f32[1,32], index: 3, kind: input, shape index: {}]   ;;  %s362_s4 = inlined_call_operand.vmem [shape: f32[1,32], index: 4, kind: input, shape index: {}]   ;;  %s363_s5 = inlined_call_operand.vmem [shape: bf16[16,32], index: 5, kind: output, shape index: {}]  }
   0x1   :  { %254 = vmatprep.subr.bf16.mxu0 %v288_v0  ;;  %v276_v1 = vld [vmem:[%s358_s1 + $0x8] sm:$0xff]   ;;  %258 = vmatprep.mubr.msk.bf16.mxu0 %vm289_vm0, %v288_v0  ;;  %v277_v2 = vld [vmem:[%s358_s1] sm:$0xff]   ;;  %v279_v4 = vld [vmem:[%s360_s2 + $0x18] sm:$0xff]   ;;  %vm224_vm3 = vcmask 257024  }
   0x2   :  { %262 = vmatprep.subr.bf16.mxu1 %v288_v0  ;;  %270 = vmatprep.mubr.msk.bf16.mxu1 %vm289_vm0, %v288_v0  ;;  %v21_v3 = vld [vmem:[%s359_s0] sm:$0xff]   ;;  %v280_v5 = vld [vmem:[%s360_s2 + $0x10] sm:$0xff]   ;;  %v281_v6 = vld [vmem:[%s360_s2 + $0x8] sm:$0xff]  }
   0x3   :  { %255 = vmatpush3.bf16.msra.mxu0 %v276_v1  ;;  %263 = vmatpush3.bf16.msra.mxu1 %v279_v4  ;;  %v282_v7 = vld [vmem:[%s360_s2] sm:$0xff]   ;;  %v100_v15 = vunpack.c.l.bf16 %v21_v3  ;;  %v101_v18 = vunpack.c.h.bf16 %v21_v3 }
   0x4   :  { %256 = vmatprep.subr.bf16.mxu0 %v288_v0  ;;  %264 = vmatprep.subr.bf16.mxu1 %v288_v0  ;;  %v240_v42 = vld [vmem:[%s361_s3] ss:$0 sm:$0xff] }
   0x5   :  { %v241_v44 = vld [vmem:[%s362_s4] ss:$0 sm:$0xff] }
   0x7   :  { %257 = vmatpush3.bf16.msra.mxu0 %v277_v2  ;;  %265 = vmatpush3.bf16.msra.mxu1 %v280_v5 }
   0x8   :  { %266 = vmatprep.subr.bf16.mxu1 %v288_v0 }
   0xa   :  { %259 = vmatmul.mubr.msk.bf16.vlgmr.msra.gmra.mxu0 %vm44_vm1, %v21_v3 }
   0xb   :  { %267 = vmatpush3.bf16.msra.mxu1 %v281_v6 }
   0xc   :  { %268 = vmatprep.subr.bf16.mxu1 %v288_v0 }
   0xf   :  { %269 = vmatpush3.bf16.msra.mxu1 %v282_v7 }
  0xca   :  { %v82_v8 = vpop.f32.mrf.mxu0 }
  0xcb   :  { %v89_v11 = vmax.f32 %v82_v8, 0.0 }
  0xcc   :  { %v260_v9 = vpop.f32.mrf.mxu0 }
  0xce   :  { %v85_v10 = vpop.f32.mrf.mxu0 }
  0xcf   :  { %v90_v12 = vmax.f32 %v85_v10, 0.0 }
  0xd0   :  { %v261_v13 = vpop.f32.mrf.mxu0 }
  0xd1   :  { %v91_v14 = vpack.c.bf16 %v90_v12, %v89_v11 }
  0xd3   :  { %271 = vmatmul.mubr.msk.bf16.vlgmr.msra.gmra.mxu1 %vm126_vm2, %v91_v14 }
 0x193   :  { %v164_v16 = vpop.f32.mrf.mxu1 }
 0x194   :  { %v165_v17 = vadd.f32 %v164_v16, %v100_v15 }
 0x195   :  { %v272_v19 = vpop.f32.mrf.mxu1 }
 0x196   :  { %v171_v20 = vsel %vm44_vm1, %v165_v17, 0.0 }
 0x197   :  { %172 = vadd.xlane.f32.xlu0 %v171_v20  ;;  %v167_v21 = vpop.f32.mrf.mxu1 }
 0x198   :  { %v168_v22 = vadd.f32 %v167_v21, %v101_v18 }
 0x199   :  { %v273_v23 = vpop.f32.mrf.mxu1 }
 0x19a   :  { %v174_v24 = vsel %vm44_vm1, %v168_v22, 0.0 }
 0x19b   :  { %175 = vadd.xlane.f32.xlu0 %v174_v24 }
 0x220   :  { %v173_v25 = vpop.xlane.xlu0 %172 }
 0x221   :  { %v178_v26 = vmul.f32 0.03125, %v173_v25 }
 0x223   :  { %v180_v27 = vsub.f32 %v165_v17, %v178_v26 }
 0x224   :  { %v176_v28 = vpop.xlane.xlu0 %175 }
 0x225   :  { %v179_v29 = vmul.f32 0.03125, %v176_v28  ;;  %v182_v30 = vmul.f32 %v180_v27, %v180_v27 }
 0x227   :  { %v181_v31 = vsub.f32 %v168_v22, %v179_v29  ;;  %v184_v32 = vsel %vm44_vm1, %v182_v30, 0.0 }
 0x228   :  { %185 = vadd.xlane.f32.xlu1 %v184_v32 }
 0x229   :  { %v183_v33 = vmul.f32 %v181_v31, %v181_v31 }
 0x22b   :  { %v187_v34 = vsel %vm44_vm1, %v183_v33, 0.0 }
 0x22c   :  { %188 = vadd.xlane.f32.xlu1 %v187_v34 }
 0x2b1   :  { %v186_v35 = vpop.xlane.xlu1 %185 }
 0x2b2   :  { %v190_v36 = vmul.f32 0.03125, %v186_v35 }
 0x2b4   :  { %v192_v37 = vadd.f32 1e-05, %v190_v36 }
 0x2b5   :  { %v189_v38 = vpop.xlane.xlu1 %188 }
 0x2b6   :  { %284 = vrsqrt.f32 %v192_v37  ;;  %v191_v39 = vmul.f32 0.03125, %v189_v38 }
 0x2b8   :  { %v193_v40 = vadd.f32 1e-05, %v191_v39 }
 0x2ba   :  { %286 = vrsqrt.f32 %v193_v40 }
 0x2c3   :  { %v285_v41 = vpop.eup %284 }
 0x2c4   :  { %v196_v43 = vmul.f32 %v285_v41, %v180_v27 }
 0x2c6   :  { %v205_v45 = vmul.f32 %v240_v42, %v196_v43 }
 0x2c7   :  { %v287_v46 = vpop.eup %286 }
 0x2c8   :  { %v214_v47 = vadd.f32 %v241_v44, %v205_v45  ;;  %v197_v48 = vmul.f32 %v287_v46, %v181_v31 }
 0x2ca   :  { %v244_v49 = vpack.c.bf16 %v214_v47, %v214_v47  ;;  %v206_v50 = vmul.f32 %v240_v42, %v197_v48 }
 0x2cc   :  { %225 = vst.msk [vmem:[%s363_s5] sm:$0xf] %vm224_vm3, %v244_v49  ;;  %v215_v51 = vadd.f32 %v241_v44, %v206_v50 }
 0x2ce   :  { %v245_v52 = vpack.c.bf16 %v215_v51, %v215_v51 }
 0x2d0   :  { %226 = vst.msk [vmem:[%s363_s5 + $0x4] sm:$0xf] %vm224_vm3, %v245_v52 }

// kernel: transformer_forward.11
= control target key start
LH: loop header
LB: loop body
LE: loop exit
PB: predicated region body
PF: predicated region fallthrough
CT: control target
= control target key end

     0   :  { %s2212_s27 = smov 0   ;;  %s2214_s28 = smov 0   ;;  %s2492_s0 = inlined_call_operand.vmem [shape: bf16[2,8,32], index: 0, kind: input, shape index: {}, may-alias: {0,1}]   ;;  %s2493_s1 = inlined_call_operand.vmem [shape: bf16[2,8,32], index: 1, kind: input, shape index: {}, may-alias: {0,1}]   ;;  %s2494_s2 = inlined_call_operand.vmem [shape: bf16[4,32,8], index: 2, kind: input, shape index: {}]   ;;  %s2495_s3 = inlined_call_operand.vmem [shape: bf16[4,32,8], index: 3, kind: input, shape index: {}]   ;;  %s2496_s4 = inlined_call_operand.vmem [shape: bf16[4,32,8], index: 4, kind: input, shape index: {}]   ;;  %s2497_s5 = inlined_call_operand.vmem [shape: bf16[4,8,32], index: 5, kind: input, shape index: {}]   ;;  %s2498_s6 = inlined_call_operand.vmem [shape: f32[1,32], index: 6, kind: input, shape index: {}]   ;;  %s2499_s7 = inlined_call_operand.vmem [shape: f32[1,32], index: 7, kind: input, shape index: {}]   ;;  %s2500_s8 = inlined_call_operand.vmem [shape: bf16[2,8,32], index: 8, kind: output, shape index: {}]  }
   0x1   :  { %s2216_s29 = smov 0  }
   0x2 LB: > { %s30_s30 = sadd.s32 1, %s2159_s28  ;;  %p1789_p0 = scmp.ge.s32.totalorder %s2163_s29, 1  ;;  %s2163_s29 = sphi %s2216_s29, %s18_s29   ;;  %s2159_s28 = sphi %s2214_s28, %s2502_s28   ;;  %s2155_s27 = sphi %s2212_s27, %s2501_s27  }
   0x3   : > { %p32_p1 = scmp.ge.s32.totalorder %s30_s30, 2  ;;  %p289_p2 = scmp.lt.s32.totalorder %s2163_s29, 3 }
   0x5   : > { %s2504_s30 = smov (%p32_p1, %s30_s30), 0  ;;  %p290_p3 = pnand %p1789_p0, %p289_p2 }
   0x6   : > { %p331_p4 = scmp.lt.s32.totalorder (!%p290_p3), %s2155_s27, 1 }
   0x7   : > { %293 = sbr.rel (%p290_p3) target bundleno = 1465 (0x5b9), region = 52 }
   0xc   : > { %v2099_v0 = vld [vmem:[%s2494_s2 + $0x8] sm:$0xff]   ;;  %v2165_v1 = vmov 0.0   ;;  %v2100_v2 = vld [vmem:[%s2494_s2 + $0x18] sm:$0xff]   ;;  %v2101_v3 = vld [vmem:[%s2494_s2] sm:$0xff]   ;;  %vm2166_vm0 = vmmov 0   ;;  %s2506_s27 = smov (!%p331_p4, %s2155_s27), 1 }
   0xd   : > { %1905 = vmatprep.subr.bf16.mxu0 %v2165_v1  ;;  %1913 = vmatprep.subr.bf16.mxu1 %v2165_v1  ;;  %v2102_v4 = vld [vmem:[%s2494_s2 + $0x10] sm:$0xff]   ;;  %vm380_vm1 = vcmask 261120   ;;  %s2250_s17 = sshll.u32 %s2506_s27, 2  ;;  %v2103_v5 = vld [vmem:[%s2494_s2 + $0x28] sm:$0xff]   ;;  %v2104_v6 = vld [vmem:[%s2494_s2 + $0x38] sm:$0xff]   ;;  %vm1043_vm2 = vcmask 64512  }
   0xe   : > { %1906 = vmatpush3.bf16.msra.mxu0 %v2099_v0  ;;  %1909 = vmatprep.mubr.msk.bf16.mxu0 %vm2166_vm0, %v2165_v1  ;;  %s337_s22 = scalar_lea.vmem %s2492_s0, %s2250_s17  ;;  %v2105_v8 = vld [vmem:[%s2494_s2 + $0x20] sm:$0xff]   ;;  %v2106_v9 = vld [vmem:[%s2494_s2 + $0x30] sm:$0xff]   ;;  %v2107_v10 = vld [vmem:[%s2495_s3 + $0x8] sm:$0xff]   ;;  %s341_s21 = scalar_lea.vmem %s2493_s1, %s2250_s17  ;;  %vm1283_vm3 = vcmask 1043456   ;;  %vm1697_vm4 = vcmask 257024  }
   0xf   : > { %1914 = vmatpush3.bf16.msra.mxu1 %v2100_v2  ;;  %1907 = vmatprep.subr.bf16.mxu0 %v2165_v1  ;;  %v2263_v7 = vld [vmem:[%s337_s22] sm:$0xf]  ;;  %v2108_v11 = vld [vmem:[%s2495_s3 + $0x18] sm:$0xff]   ;;  %v2110_v13 = vld [vmem:[%s2495_s3 + $0x10] sm:$0xff]   ;;  %s348_s24 = scalar_lea.vmem %s2500_s8, %s2250_s17 }
  0x10   : > { %1915 = vmatprep.subr.bf16.mxu1 %v2165_v1  ;;  %1917 = vmatprep.mubr.msk.bf16.mxu1 %vm2166_vm0, %v2165_v1  ;;  %v2109_v12 = vld [vmem:[%s2495_s3] sm:$0xff]   ;;  %v2111_v15 = vld [vmem:[%s2495_s3 + $0x28] sm:$0xff]   ;;  %v2112_v16 = vld [vmem:[%s2495_s3 + $0x38] sm:$0xff]  }
  0x11   : > { %v351_v14 = vld [vmem:[%s341_s21] sm:$0xf]  ;;  %v2114_v18 = vld [vmem:[%s2495_s3 + $0x30] sm:$0xff]   ;;  %v2115_v19 = vld [vmem:[%s2496_s4 + $0x8] sm:$0xff]  }
  0x12   : > { %1908 = vmatpush3.bf16.msra.mxu0 %v2101_v3  ;;  %v2113_v17 = vld [vmem:[%s2495_s3 + $0x20] sm:$0xff]   ;;  %v2117_v21 = vld [vmem:[%s2496_s4 + $0x18] sm:$0xff]   ;;  %v2118_v22 = vld [vmem:[%s2496_s4 + $0x10] sm:$0xff]  }
  0x13   : > { %1916 = vmatpush3.bf16.msra.mxu1 %v2102_v4  ;;  %1921 = vmatprep.subr.bf16.mxu0 %v2165_v1  ;;  %v2116_v20 = vld [vmem:[%s2496_s4] sm:$0xff]   ;;  %v2119_v23 = vld [vmem:[%s2496_s4 + $0x28] sm:$0xff]   ;;  %v2121_v25 = vld [vmem:[%s2496_s4 + $0x38] sm:$0xff]  }
  0x14   : > { %1929 = vmatprep.subr.bf16.mxu1 %v2165_v1  ;;  %v2120_v24 = vld [vmem:[%s2496_s4 + $0x20] sm:$0xff]   ;;  %v2122_v26 = vld [vmem:[%s2496_s4 + $0x30] sm:$0xff]  }
  0x15   : > { %1910 = vmatmul.mubr.msk.bf16.vlgmr.msra.gmra.mxu0 %vm380_vm1, %v2263_v7 }
  0x16   : > { %1918 = vmatmul.mubr.msk.bf16.vlgmr.msra.gmra.mxu1 %vm380_vm1, %v2263_v7  ;;  %1922 = vmatpush3.bf16.msra.mxu0 %v2103_v5 }
  0x17   : > { %1930 = vmatpush3.bf16.msra.mxu1 %v2104_v6  ;;  %1923 = vmatprep.subr.bf16.mxu0 %v2165_v1 }
  0x18   : > { %1931 = vmatprep.subr.bf16.mxu1 %v2165_v1  ;;  %1925 = vmatprep.mubr.msk.bf16.mxu0 %vm2166_vm0, %v2165_v1 }
  0x19   : > { %1933 = vmatprep.mubr.msk.bf16.mxu1 %vm2166_vm0, %v2165_v1 }
  0x1a   : > { %1924 = vmatpush3.bf16.msra.mxu0 %v2105_v8 }
  0x1b   : > { %1932 = vmatpush3.bf16.msra.mxu1 %v2106_v9  ;;  %1937 = vmatprep.subr.bf16.mxu0 %v2165_v1 }
  0x1c   : > { %1945 = vmatprep.subr.bf16.mxu1 %v2165_v1 }
  0x1d   : > { %1926 = vmatmul.mubr.msk.bf16.vlgmr.msra.gmra.mxu0 %vm380_vm1, %v2263_v7 }
  0x1e   : > { %1934 = vmatmul.mubr.msk.bf16.vlgmr.msra.gmra.mxu1 %vm380_vm1, %v2263_v7  ;;  %1938 = vmatpush3.bf16.msra.mxu0 %v2107_v10 }
  0x1f   : > { %1946 = vmatpush3.bf16.msra.mxu1 %v2108_v11  ;;  %1939 = vmatprep.subr.bf16.mxu0 %v2165_v1 }
  0x20   : > { %1947 = vmatprep.subr.bf16.mxu1 %v2165_v1  ;;  %1941 = vmatprep.mubr.msk.bf16.mxu0 %vm2166_vm0, %v2165_v1 }
  0x21   : > { %1949 = vmatprep.mubr.msk.bf16.mxu1 %vm2166_vm0, %v2165_v1 }
  0x22   : > { %1940 = vmatpush3.bf16.msra.mxu0 %v2109_v12 }
  0x23   : > { %1948 = vmatpush3.bf16.msra.mxu1 %v2110_v13  ;;  %1953 = vmatprep.subr.bf16.mxu0 %v2165_v1 }
  0x24   : > { %1961 = vmatprep.subr.bf16.mxu1 %v2165_v1 }
  0x25   : > { %1942 = vmatmul.mubr.msk.bf16.vlgmr.msra.gmra.mxu0 %vm380_vm1, %v351_v14 }
  0x26   : > { %1950 = vmatmul.mubr.msk.bf16.vlgmr.msra.gmra.mxu1 %vm380_vm1, %v351_v14  ;;  %1954 = vmatpush3.bf16.msra.mxu0 %v2111_v15 }
  0x27   : > { %1962 = vmatpush3.bf16.msra.mxu1 %v2112_v16  ;;  %1955 = vmatprep.subr.bf16.mxu0 %v2165_v1 }
  0x28   : > { %1963 = vmatprep.subr.bf16.mxu1 %v2165_v1  ;;  %1957 = vmatprep.mubr.msk.bf16.mxu0 %vm2166_vm0, %v2165_v1 }
  0x29   : > { %1965 = vmatprep.mubr.msk.bf16.mxu1 %vm2166_vm0, %v2165_v1 }
  0x2a   : > { %1956 = vmatpush3.bf16.msra.mxu0 %v2113_v17 }
  0x2b   : > { %1964 = vmatpush3.bf16.msra.mxu1 %v2114_v18  ;;  %1969 = vmatprep.subr.bf16.mxu0 %v2165_v1 }
  0x2c   : > { %1977 = vmatprep.subr.bf16.mxu1 %v2165_v1 }
  0x2d   : > { %1958 = vmatmul.mubr.msk.bf16.vlgmr.msra.gmra.mxu0 %vm380_vm1, %v351_v14 }
  0x2e   : > { %1966 = vmatmul.mubr.msk.bf16.vlgmr.msra.gmra.mxu1 %vm380_vm1, %v351_v14  ;;  %1970 = vmatpush3.bf16.msra.mxu0 %v2115_v19 }
  0x2f   : > { %1971 = vmatprep.subr.bf16.mxu0 %v2165_v1  ;;  %1973 = vmatprep.mubr.msk.bf16.mxu0 %vm2166_vm0, %v2165_v1 }
  0x30   : > { %1981 = vmatprep.mubr.msk.bf16.mxu1 %vm2166_vm0, %v2165_v1  ;;  %1978 = vmatpush3.bf16.msra.mxu1 %v2117_v21 }
  0x31   : > { %1979 = vmatprep.subr.bf16.mxu1 %v2165_v1 }
  0x32   : > { %1972 = vmatpush3.bf16.msra.mxu0 %v2116_v20 }
  0x33   : > { %1985 = vmatprep.subr.bf16.mxu0 %v2165_v1 }
  0x34   : > { %1980 = vmatpush3.bf16.msra.mxu1 %v2118_v22 }
  0x35   : > { %1974 = vmatmul.mubr.msk.bf16.vlgmr.msra.gmra.mxu0 %vm380_vm1, %v351_v14  ;;  %1993 = vmatprep.subr.bf16.mxu1 %v2165_v1 }
  0x36   : > { %1986 = vmatpush3.bf16.msra.mxu0 %v2119_v23  ;;  %1989 = vmatprep.mubr.msk.bf16.mxu0 %vm2166_vm0, %v2165_v1 }
  0x37   : > { %1987 = vmatprep.subr.bf16.mxu0 %v2165_v1  ;;  %1982 = vmatmul.mubr.msk.bf16.vlgmr.msra.gmra.mxu1 %vm380_vm1, %v351_v14 }
  0x38   : > { %1994 = vmatpush3.bf16.msra.mxu1 %v2121_v25  ;;  %1997 = vmatprep.mubr.msk.bf16.mxu1 %vm2166_vm0, %v2165_v1 }
  0x39   : > { %1995 = vmatprep.subr.bf16.mxu1 %v2165_v1 }
  0x3a   : > { %1988 = vmatpush3.bf16.msra.mxu0 %v2120_v24 }
  0x3b   : > { %2001 = vmatprep.subr.bf16.mxu0 %v2165_v1 }
  0x3c   : > { %1996 = vmatpush3.bf16.msra.mxu1 %v2122_v26 }
  0x3d   : > { %1990 = vmatmul.mubr.msk.bf16.vlgmr.msra.gmra.mxu0 %vm380_vm1, %v351_v14  ;;  %2007 = vmatprep.subr.bf16.mxu1 %v2165_v1 }
  0x3e   : > { %2003 = vmatprep.mubr.msk.bf16.mxu0 %vm2166_vm0, %v2165_v1 }
  0x3f   : > { %1998 = vmatmul.mubr.msk.bf16.vlgmr.msra.gmra.mxu1 %vm380_vm1, %v351_v14 }
  0x40   : > { %2009 = vmatprep.mubr.msk.bf16.mxu1 %vm2166_vm0, %v2165_v1 }
  0xd5   : > { %v418_v27 = vpop.f32.mrf.mxu0 }
  0xd6   : > { %v470_v28 = vpop.f32.mrf.mxu1  ;;  %v580_v56 = vpack.c.bf16 %v418_v27, %v418_v27 }
  0xd7   : > { %v1911_v29 = vpop.f32.mrf.mxu0  ;;  %v581_v59 = vpack.c.bf16 %v470_v28, %v470_v28 }
  0xd8   : > { %v1919_v30 = vpop.f32.mrf.mxu1 }
  0xd9   : > { %v421_v31 = vpop.f32.mrf.mxu0 }
  0xda   : > { %v473_v32 = vpop.f32.mrf.mxu1 }
  0xdb   : > { %v1912_v33 = vpop.f32.mrf.mxu0 }
  0xdc   : > { %v1920_v34 = vpop.f32.mrf.mxu1 }
  0xdd   : > { %v522_v35 = vpop.f32.mrf.mxu0 }
  0xde   : > { %v574_v36 = vpop.f32.mrf.mxu1  ;;  %v582_v6 = vpack.c.bf16 %v522_v35, %v522_v35 }
  0xdf   : > { %v1927_v37 = vpop.f32.mrf.mxu0  ;;  %v583_v8 = vpack.c.bf16 %v574_v36, %v574_v36 }
  0xe0   : > { %v1935_v38 = vpop.f32.mrf.mxu1 }
  0xe1   : > { %v525_v39 = vpop.f32.mrf.mxu0 }
  0xe2   : > { %v577_v40 = vpop.f32.mrf.mxu1 }
  0xe3   : > { %v1928_v41 = vpop.f32.mrf.mxu0 }
  0xe4   : > { %v1936_v42 = vpop.f32.mrf.mxu1 }
  0xe5   : > { %v649_v43 = vpop.f32.mrf.mxu0 }
  0xe6   : > { %v811_v44 = vpack.c.bf16 %v649_v43, %v649_v43  ;;  %v701_v45 = vpop.f32.mrf.mxu1 }
  0xe7   : > { %v812_v46 = vpack.c.bf16 %v701_v45, %v701_v45  ;;  %v1943_v47 = vpop.f32.mrf.mxu0 }
  0xe8   : > { %v1048_v48 = vsel %vm1043_vm2, %v811_v44, 0  ;;  %v1951_v49 = vpop.f32.mrf.mxu1 }
  0xe9   : > { %v1094_v50 = vsel %vm1043_vm2, %v812_v46, 0  ;;  %v652_v51 = vpop.f32.mrf.mxu0  ;;  %2002 = vmatpush3.bf16.xpose.msra.mxu0 %v1048_v48 }
  0xea   : > { %v704_v52 = vpop.f32.mrf.mxu1  ;;  %2008 = vmatpush3.bf16.xpose.msra.mxu1 %v1094_v50  ;;  %2013 = vmatprep.subr.bf16.mxu0 %v2165_v1 }
  0xeb   : > { %v1944_v53 = vpop.f32.mrf.mxu0  ;;  %2019 = vmatprep.subr.bf16.mxu1 %v2165_v1 }
  0xec   : > { %v1952_v54 = vpop.f32.mrf.mxu1 }
  0xed   : > { %v753_v55 = vpop.f32.mrf.mxu0 }
  0xee   : > { %v813_v57 = vpack.c.bf16 %v753_v55, %v753_v55  ;;  %v805_v58 = vpop.f32.mrf.mxu1 }
  0xef   : > { %v814_v60 = vpack.c.bf16 %v805_v58, %v805_v58  ;;  %v1959_v61 = vpop.f32.mrf.mxu0 }
  0xf0   : > { %v1140_v62 = vsel %vm1043_vm2, %v813_v57, 0  ;;  %v1967_v63 = vpop.f32.mrf.mxu1  ;;  %2004 = vmatmul.mubr.msk.bf16.vlgmr.msra.gmra.mxu0 %vm1043_vm2, %v580_v56 }
  0xf1   : > { %v1186_v0 = vsel %vm1043_vm2, %v814_v60, 0  ;;  %2010 = vmatmul.mubr.msk.bf16.vlgmr.msra.gmra.mxu1 %vm1043_vm2, %v581_v59  ;;  %v756_v2 = vpop.f32.mrf.mxu0  ;;  %2014 = vmatpush3.bf16.xpose.msra.mxu0 %v1140_v62 }
  0xf2   : > { %v808_v3 = vpop.f32.mrf.mxu1  ;;  %2020 = vmatpush3.bf16.xpose.msra.mxu1 %v1186_v0  ;;  %2015 = vmatprep.mubr.msk.bf16.mxu0 %vm2166_vm0, %v2165_v1 }
  0xf3   : > { %v1960_v4 = vpop.f32.mrf.mxu0  ;;  %2021 = vmatprep.mubr.msk.bf16.mxu1 %vm2166_vm0, %v2165_v1  ;;  %2025 = vmatprep.subr.bf16.mxu0 %v2165_v1 }
  0xf4   : > { %v1968_v5 = vpop.f32.mrf.mxu1  ;;  %2031 = vmatprep.subr.bf16.mxu1 %v2165_v1 }
  0xf5   : > { %v877_v9 = vpop.f32.mrf.mxu0 }
  0xf6   : > { %v1039_v10 = vpack.c.bf16 %v877_v9, %v877_v9 }
  0xf7   : > { %v1975_v11 = vpop.f32.mrf.mxu0  ;;  %v929_v14 = vpop.f32.mrf.mxu1 }
  0xf8   : > { %2016 = vmatmul.mubr.msk.bf16.vlgmr.msra.gmra.mxu0 %vm1043_vm2, %v582_v6  ;;  %v1285_v12 = vsel %vm1283_vm3, %v1039_v10, 0  ;;  %v1040_v15 = vpack.c.bf16 %v929_v14, %v929_v14 }
  0xf9   : > { %2022 = vmatmul.mubr.msk.bf16.vlgmr.msra.gmra.mxu1 %vm1043_vm2, %v583_v8  ;;  %2027 = vmatprep.mubr.msk.bf16.mxu0 %vm2166_vm0, %v2165_v1  ;;  %v880_v13 = vpop.f32.mrf.mxu0  ;;  %v1983_v17 = vpop.f32.mrf.mxu1 }
  0xfa   : > { %2033 = vmatprep.mubr.msk.bf16.mxu1 %vm2166_vm0, %v2165_v1  ;;  %2026 = vmatpush3.bf16.msra.mxu0 %v1285_v12  ;;  %v1331_v18 = vsel %vm1283_vm3, %v1040_v15, 0 }
  0xfb   : > { %2037 = vmatprep.subr.bf16.mxu0 %v2165_v1  ;;  %v1976_v16 = vpop.f32.mrf.mxu0  ;;  %v932_v19 = vpop.f32.mrf.mxu1  ;;  %2032 = vmatpush3.bf16.msra.mxu1 %v1331_v18 }
  0xfc   : > { %2043 = vmatprep.subr.bf16.mxu1 %v2165_v1 }
  0xfd   : > { %v2407_v20 = vpop.f32.mrf.mxu0  ;;  %v1984_v21 = vpop.f32.mrf.mxu1 }
  0xfe   : > { %v1041_v16 = vpack.c.bf16 %v2407_v20, %v2407_v20  ;;  %v1469_v20 = vld [vmem:[%s2497_s5] sm:$0xf] }
  0xff   : > { %v1991_v22 = vpop.f32.mrf.mxu0  ;;  %v2410_v24 = vpop.f32.mrf.mxu1 }
 0x100   : > { %v1377_v21 = vsel %vm1283_vm3, %v1041_v16, 0  ;;  %v1042_v22 = vpack.c.bf16 %v2410_v24, %v2410_v24 }
 0x101   : > { %v984_v23 = vpop.f32.mrf.mxu0  ;;  %v1999_v26 = vpop.f32.mrf.mxu1 }
 0x103   : > { %v1992_v25 = vpop.f32.mrf.mxu0  ;;  %v1036_v27 = vpop.f32.mrf.mxu1 }
 0x104   : > { %v1423_v27 = vsel %vm1283_vm3, %v1042_v22, 0 }
 0x105   : > { %v2000_v28 = vpop.f32.mrf.mxu1 }
 0x1b0   : > { %v1084_v29 = vpop.f32.mrf.mxu0 }
 0x1b1   : > { %v1228_v30 = vmul.f32 0.35355338, %v1084_v29  ;;  %v1130_v31 = vpop.f32.mrf.mxu1  ;;  %v1477_v29 = vsel %vm1283_vm3, %v1469_v20, 0 }
 0x1b2   : > { %v2005_v32 = vpop.f32.mrf.mxu0  ;;  %v1229_v33 = vmul.f32 0.35355338, %v1130_v31 }
 0x1b3   : > { %v2011_v34 = vpop.f32.mrf.mxu1  ;;  %v1232_v35 = vsel %vm1043_vm2, %v1228_v30, -inf }
 0x1b4   : > { %1233 = vmax.xlane.f32.xlu0 %v1232_v35  ;;  %v1087_v36 = vpop.f32.mrf.mxu0  ;;  %v1235_v40 = vsel %vm1043_vm2, %v1229_v33, -inf  ;;  %v1471_v35 = vld [vmem:[%s2497_s5 + $0x8] sm:$0xf] }
 0x1b5   : > { %v1133_v37 = vpop.f32.mrf.mxu1 }
 0x1b6   : > { %v2006_v38 = vpop.f32.mrf.mxu0 }
 0x1b7   : > { %v2012_v39 = vpop.f32.mrf.mxu1  ;;  %v1569_v38 = vsel %vm1283_vm3, %v1471_v35, 0 }
 0x1b8   : > { %1236 = vmax.xlane.f32.xlu0 %v1235_v40  ;;  %v1176_v41 = vpop.f32.mrf.mxu0  ;;  %v1472_v40 = vld [vmem:[%s2497_s5 + $0xc] sm:$0xf] }
 0x1b9   : > { %v1222_v42 = vpop.f32.mrf.mxu1  ;;  %v1230_v43 = vmul.f32 0.35355338, %v1176_v41 }
 0x1ba   : > { %v2017_v44 = vpop.f32.mrf.mxu0  ;;  %v1231_v45 = vmul.f32 0.35355338, %v1222_v42 }
 0x1bb   : > { %v2023_v46 = vpop.f32.mrf.mxu1  ;;  %v1238_v47 = vsel %vm1043_vm2, %v1230_v43, -inf  ;;  %v1615_v44 = vsel %vm1283_vm3, %v1472_v40, 0 }
 0x1bc   : > { %1239 = vmax.xlane.f32.xlu1 %v1238_v47  ;;  %v1179_v48 = vpop.f32.mrf.mxu0  ;;  %v1241_v52 = vsel %vm1043_vm2, %v1231_v45, -inf }
 0x1bd   : > { %v1225_v49 = vpop.f32.mrf.mxu1 }
 0x1be   : > { %v2018_v50 = vpop.f32.mrf.mxu0 }
 0x1bf   : > { %v2024_v51 = vpop.f32.mrf.mxu1 }
 0x1c0   : > { %1242 = vmax.xlane.f32.xlu1 %v1241_v52 }
 0x23d   : > { %v1234_v53 = vpop.xlane.xlu0 %1233 }
 0x23e   : > { %v1244_v54 = vsub.f32 %v1228_v30, %v1234_v53 }
 0x240   : > { %v1248_v55 = vmul.f32 1.442695, %v1244_v54 }
 0x241   : > { %v1237_v56 = vpop.xlane.xlu0 %1236 }
 0x242   : > { %2123 = vpow2.f32 %v1248_v55  ;;  %v1245_v57 = vsub.f32 %v1229_v33, %v1237_v56  ;;  %v1470_v33 = vld [vmem:[%s2497_s5 + $0x4] sm:$0xf] }
 0x243   : > { %v1523_v34 = vsel %vm1283_vm3, %v1470_v33, 0 }
 0x244   : > { %v1250_v58 = vmul.f32 1.442695, %v1245_v57 }
 0x245   : > { %v1240_v59 = vpop.xlane.xlu1 %1239 }
 0x246   : > { %2125 = vpow2.f32 %v1250_v58  ;;  %v1246_v60 = vsub.f32 %v1230_v43, %v1240_v59 }
 0x248   : > { %v1252_v61 = vmul.f32 1.442695, %v1246_v60 }
 0x249   : > { %v1243_v62 = vpop.xlane.xlu1 %1242 }
 0x24a   : > { %2127 = vpow2.f32 %v1252_v61  ;;  %v1247_v63 = vsub.f32 %v1231_v45, %v1243_v62 }
 0x24c   : > { %v1254_v0 = vmul.f32 1.442695, %v1247_v63 }
 0x24e   : > { %2129 = vpow2.f32 %v1254_v0 }
 0x24f   : > { %v2124_v2 = vpop.eup %2123 }
 0x250   : > { %v1256_v3 = vsel %vm1043_vm2, %v2124_v2, 0.0 }
 0x251   : > { %1257 = vadd.xlane.f32.xlu0 %v1256_v3 }
 0x253   : > { %v2126_v4 = vpop.eup %2125 }
 0x254   : > { %v1259_v5 = vsel %vm1043_vm2, %v2126_v4, 0.0 }
 0x255   : > { %1260 = vadd.xlane.f32.xlu1 %v1259_v5 }
 0x257   : > { %v2128_v6 = vpop.eup %2127 }
 0x258   : > { %v1262_v8 = vsel %vm1043_vm2, %v2128_v6, 0.0 }
 0x259   : > { %1263 = vadd.xlane.f32.xlu0 %v1262_v8 }
 0x25b   : > { %v2130_v9 = vpop.eup %2129 }
 0x25c   : > { %v1265_v10 = vsel %vm1043_vm2, %v2130_v9, 0.0 }
 0x25d   : > { %1266 = vadd.xlane.f32.xlu1 %v1265_v10 }
 0x2da   : > { %v1258_v11 = vpop.xlane.xlu0 %1257 }
 0x2db   : > { %2131 = vrcp.f32 %v1258_v11 }
 0x2de   : > { %v1261_v12 = vpop.xlane.xlu1 %1260 }
 0x2df   : > { %2133 = vrcp.f32 %v1261_v12 }
 0x2e2   : > { %v1264_v13 = vpop.xlane.xlu0 %1263 }
 0x2e3   : > { %2135 = vrcp.f32 %v1264_v13  ;;  %v1664_v13 = vunpack.c.l.bf16 %v2263_v7 }
 0x2e6   : > { %v1267_v14 = vpop.xlane.xlu1 %1266 }
 0x2e7   : > { %2137 = vrcp.f32 %v1267_v14 }
 0x2e8   : > { %v2132_v15 = vpop.eup %2131 }
 0x2e9   : > { %v1272_v17 = vmul.f32 %v2132_v15, %v2124_v2 }
 0x2eb   : > { %v1276_v18 = vpack.c.bf16 %v1272_v17, %v1272_v17 }
 0x2ec   : > { %v2134_v19 = vpop.eup %2133 }
 0x2ed   : > { %2028 = vmatmul.mubr.msk.bf16.vlgmr.msra.gmra.mxu0 %vm1043_vm2, %v1276_v18  ;;  %v1273_v23 = vmul.f32 %v2134_v19, %v2126_v4 }
 0x2ee   : > { %2038 = vmatpush3.bf16.msra.mxu0 %v1377_v21  ;;  %2039 = vmatprep.mubr.msk.bf16.mxu0 %vm2166_vm0, %v2165_v1 }
 0x2ef   : > { %v1277_v25 = vpack.c.bf16 %v1273_v23, %v1273_v23  ;;  %2049 = vmatprep.subr.bf16.mxu0 %v2165_v1 }
 0x2f0   : > { %v2136_v26 = vpop.eup %2135 }
 0x2f1   : > { %2034 = vmatmul.mubr.msk.bf16.vlgmr.msra.gmra.mxu1 %vm1043_vm2, %v1277_v25  ;;  %v1274_v24 = vmul.f32 %v2136_v26, %v2128_v6 }
 0x2f2   : > { %2044 = vmatpush3.bf16.msra.mxu1 %v1423_v27  ;;  %2045 = vmatprep.mubr.msk.bf16.mxu1 %vm2166_vm0, %v2165_v1 }
 0x2f3   : > { %v1278_v28 = vpack.c.bf16 %v1274_v24, %v1274_v24  ;;  %2055 = vmatprep.subr.bf16.mxu1 %v2165_v1 }
 0x2f4   : > { %v2138_v30 = vpop.eup %2137 }
 0x2f5   : > { %2040 = vmatmul.mubr.msk.bf16.vlgmr.msra.gmra.mxu0 %vm1043_vm2, %v1278_v28  ;;  %v1275_v31 = vmul.f32 %v2138_v30, %v2130_v9  ;;  %v1841_v30 = vld [vmem:[%s2498_s6] ss:$0 sm:$0xff] }
 0x2f6   : > { %2050 = vmatpush3.bf16.msra.mxu0 %v1477_v29  ;;  %2051 = vmatprep.mubr.msk.bf16.mxu0 %vm2166_vm0, %v2165_v1 }
 0x2f7   : > { %v1279_v32 = vpack.c.bf16 %v1275_v31, %v1275_v31  ;;  %2061 = vmatprep.subr.bf16.mxu0 %v2165_v1 }
 0x2f9   : > { %2046 = vmatmul.mubr.msk.bf16.vlgmr.msra.gmra.mxu1 %vm1043_vm2, %v1279_v32  ;;  %v1842_v32 = vld [vmem:[%s2499_s7] ss:$0 sm:$0xff] }
 0x2fa   : > { %2057 = vmatprep.mubr.msk.bf16.mxu1 %vm2166_vm0, %v2165_v1  ;;  %2056 = vmatpush3.bf16.msra.mxu1 %v1523_v34 }
 0x2fb   : > { %2067 = vmatprep.subr.bf16.mxu1 %v2165_v1 }
 0x3ad   : > { %v1321_v36 = vpop.f32.mrf.mxu0 }
 0x3ae   : > { %v1465_v37 = vpack.c.bf16 %v1321_v36, %v1321_v36 }
 0x3af   : > { %v2029_v39 = vpop.f32.mrf.mxu0 }
 0x3b0   : > { %2052 = vmatmul.mubr.msk.bf16.vlgmr.msra.gmra.mxu0 %vm1043_vm2, %v1465_v37 }
 0x3b1   : > { %v1324_v41 = vpop.f32.mrf.mxu0  ;;  %v1367_v42 = vpop.f32.mrf.mxu1  ;;  %2062 = vmatpush3.bf16.msra.mxu0 %v1569_v38  ;;  %2063 = vmatprep.mubr.msk.bf16.mxu0 %vm2166_vm0, %v2165_v1 }
 0x3b2   : > { %v1466_v43 = vpack.c.bf16 %v1367_v42, %v1367_v42 }
 0x3b3   : > { %v2030_v45 = vpop.f32.mrf.mxu0  ;;  %v2035_v46 = vpop.f32.mrf.mxu1 }
 0x3b4   : > { %2058 = vmatmul.mubr.msk.bf16.vlgmr.msra.gmra.mxu1 %vm1043_vm2, %v1466_v43 }
 0x3b5   : > { %v1370_v47 = vpop.f32.mrf.mxu1  ;;  %v1413_v48 = vpop.f32.mrf.mxu0  ;;  %2068 = vmatpush3.bf16.msra.mxu1 %v1615_v44  ;;  %2069 = vmatprep.mubr.msk.bf16.mxu1 %vm2166_vm0, %v2165_v1 }
 0x3b6   : > { %v1467_v49 = vpack.c.bf16 %v1413_v48, %v1413_v48 }
 0x3b7   : > { %v2036_v50 = vpop.f32.mrf.mxu1  ;;  %v2041_v51 = vpop.f32.mrf.mxu0 }
 0x3b8   : > { %2064 = vmatmul.mubr.msk.bf16.vlgmr.msra.gmra.mxu0 %vm1043_vm2, %v1467_v49 }
 0x3b9   : > { %v1416_v52 = vpop.f32.mrf.mxu0  ;;  %v1459_v53 = vpop.f32.mrf.mxu1 }
 0x3ba   : > { %v1468_v54 = vpack.c.bf16 %v1459_v53, %v1459_v53 }
 0x3bb   : > { %v2042_v55 = vpop.f32.mrf.mxu0  ;;  %v2047_v56 = vpop.f32.mrf.mxu1 }
 0x3bc   : > { %2070 = vmatmul.mubr.msk.bf16.vlgmr.msra.gmra.mxu1 %vm1043_vm2, %v1468_v54 }
 0x3bd   : > { %v1462_v57 = vpop.f32.mrf.mxu1 }
 0x3bf   : > { %v2048_v58 = vpop.f32.mrf.mxu1 }
 0x470   : > { %v1513_v59 = vpop.f32.mrf.mxu0 }
 0x471   : > { %v1657_v4 = vsel %vm380_vm1, %v1513_v59, 0.0 }
 0x472   : > { %v2053_v60 = vpop.f32.mrf.mxu0 }
 0x474   : > { %v1516_v61 = vpop.f32.mrf.mxu0  ;;  %v1559_v62 = vpop.f32.mrf.mxu1 }
 0x475   : > { %v1658_v0 = vsel %vm380_vm1, %v1559_v62, 0.0 }
 0x476   : > { %v2054_v63 = vpop.f32.mrf.mxu0  ;;  %v2059_v1 = vpop.f32.mrf.mxu1  ;;  %v1659_v6 = vadd.f32 %v1658_v0, %v1657_v4 }
 0x478   : > { %v1562_v2 = vpop.f32.mrf.mxu1  ;;  %v1605_v3 = vpop.f32.mrf.mxu0 }
 0x479   : > { %v1660_v5 = vsel %vm380_vm1, %v1605_v3, 0.0 }
 0x47a   : > { %v2060_v8 = vpop.f32.mrf.mxu1  ;;  %v2065_v9 = vpop.f32.mrf.mxu0  ;;  %v1661_v10 = vadd.f32 %v1660_v5, %v1659_v6 }
 0x47c   : > { %v1608_v11 = vpop.f32.mrf.mxu0  ;;  %v1651_v12 = vpop.f32.mrf.mxu1 }
 0x47d   : > { %v1662_v14 = vsel %vm380_vm1, %v1651_v12, 0.0 }
 0x47e   : > { %v1663_v15 = vadd.f32 %v1662_v14, %v1661_v10  ;;  %v2066_v16 = vpop.f32.mrf.mxu0  ;;  %v2071_v17 = vpop.f32.mrf.mxu1 }
 0x480   : > { %v1654_v18 = vpop.f32.mrf.mxu1  ;;  %v1665_v19 = vadd.f32 %v1664_v13, %v1663_v15 }
 0x482   : > { %v2072_v21 = vpop.f32.mrf.mxu1  ;;  %v1666_v22 = vsel %vm380_vm1, %v1665_v19, 0.0 }
 0x483   : > { %1667 = vadd.xlane.f32.xlu0 %v1666_v22 }
 0x50c   : > { %v1668_v23 = vpop.xlane.xlu0 %1667 }
 0x50d   : > { %v1670_v25 = vmul.f32 0.03125, %v1668_v23 }
 0x50f   : > { %v1671_v26 = vsub.f32 %v1665_v19, %v1670_v25 }
 0x511   : > { %v1672_v20 = vmul.f32 %v1671_v26, %v1671_v26 }
 0x513   : > { %v1673_v27 = vsel %vm380_vm1, %v1672_v20, 0.0 }
 0x514   : > { %1674 = vadd.xlane.f32.xlu1 %v1673_v27 }
 0x59d   : > { %v1675_v7 = vpop.xlane.xlu1 %1674 }
 0x59e   : > { %v1676_v24 = vmul.f32 0.03125, %v1675_v7 }
 0x5a0   : > { %v1677_v28 = vadd.f32 1e-05, %v1676_v24 }
 0x5a2   : > { %2139 = vrsqrt.f32 %v1677_v28 }
 0x5af   : > { %v2140_v29 = vpop.eup %2139 }
 0x5b0   : > { %v1679_v31 = vmul.f32 %v2140_v29, %v1671_v26 }
 0x5b2   : > { %v1687_v33 = vmul.f32 %v1841_v30, %v1679_v31 }
 0x5b4   : > { %v1695_v34 = vadd.f32 %v1842_v32, %v1687_v33 }
 0x5b6   : > { %v1696_v35 = vpack.c.bf16 %v1695_v34, %v1695_v34 }
 0x5b8   : > { %1698 = vst.msk [vmem:[%s348_s24] sm:$0xf] %vm1697_vm4, %v1696_v35 }
 0x5b9 PF: > { %s18_s29 = sadd.s32 1, %s2163_s29   ;;  %s2501_s27 = smov %s2159_s28 }
 0x5ba   : > { %p15_p5 = scmp.ge.s32.totalorder %s18_s29, 4   ;;  %s2502_s28 = smov %s2504_s30 }
 0x5bc   :  { %17 = sbr.rel (!%p15_p5) target bundleno = 2 (0x2), region = 85 }

// kernel: transformer_forward.15
= control target key start
LH: loop header
LB: loop body
LE: loop exit
PB: predicated region body
PF: predicated region fallthrough
CT: control target
= control target key end

     0   :  { %s2224_s27 = smov 0   ;;  %s2226_s28 = smov 0   ;;  %s2508_s0 = inlined_call_operand.vmem [shape: bf16[2,8,32], index: 0, kind: input, shape index: {}, may-alias: {0,1}]   ;;  %s2509_s1 = inlined_call_operand.vmem [shape: bf16[2,8,32], index: 1, kind: input, shape index: {}, may-alias: {0,1}]   ;;  %s2510_s2 = inlined_call_operand.vmem [shape: bf16[4,32,8], index: 2, kind: input, shape index: {}]   ;;  %s2511_s3 = inlined_call_operand.vmem [shape: bf16[4,32,8], index: 3, kind: input, shape index: {}]   ;;  %s2512_s4 = inlined_call_operand.vmem [shape: bf16[4,32,8], index: 4, kind: input, shape index: {}]   ;;  %s2513_s5 = inlined_call_operand.vmem [shape: bf16[4,8,32], index: 5, kind: input, shape index: {}]   ;;  %s2514_s6 = inlined_call_operand.vmem [shape: f32[1,32], index: 6, kind: input, shape index: {}]   ;;  %s2515_s7 = inlined_call_operand.vmem [shape: f32[1,32], index: 7, kind: input, shape index: {}]   ;;  %s2516_s8 = inlined_call_operand.vmem [shape: bf16[2,8,32], index: 8, kind: output, shape index: {}]  }
   0x1   :  { %s2228_s29 = smov 0  }
   0x2 LB: > { %s30_s30 = sadd.s32 1, %s2171_s28  ;;  %p1801_p0 = scmp.ge.s32.totalorder %s2175_s29, 1  ;;  %s2175_s29 = sphi %s2228_s29, %s18_s29   ;;  %s2171_s28 = sphi %s2226_s28, %s2518_s28   ;;  %s2167_s27 = sphi %s2224_s27, %s2517_s27  }
   0x3   : > { %p32_p1 = scmp.ge.s32.totalorder %s30_s30, 2  ;;  %p289_p2 = scmp.lt.s32.totalorder %s2175_s29, 3 }
   0x5   : > { %s2520_s30 = smov (%p32_p1, %s30_s30), 0  ;;  %p290_p3 = pnand %p1801_p0, %p289_p2 }
   0x6   : > { %p331_p4 = scmp.lt.s32.totalorder (!%p290_p3), %s2167_s27, 1 }
   0x7   : > { %293 = sbr.rel (%p290_p3) target bundleno = 1466 (0x5ba), region = 52 }
   0xc   : > { %v2111_v0 = vld [vmem:[%s2510_s2 + $0x8] sm:$0xff]   ;;  %v2177_v1 = vmov 0.0   ;;  %v2112_v2 = vld [vmem:[%s2510_s2 + $0x18] sm:$0xff]   ;;  %v2113_v3 = vld [vmem:[%s2510_s2] sm:$0xff]   ;;  %vm2178_vm0 = vmmov 0   ;;  %s2522_s27 = smov (!%p331_p4, %s2167_s27), 1 }
   0xd   : > { %1917 = vmatprep.subr.bf16.mxu0 %v2177_v1  ;;  %1925 = vmatprep.subr.bf16.mxu1 %v2177_v1  ;;  %v2114_v4 = vld [vmem:[%s2510_s2 + $0x10] sm:$0xff]   ;;  %vm380_vm1 = vcmask 261120   ;;  %s2262_s17 = sshll.u32 %s2522_s27, 2  ;;  %v2115_v5 = vld [vmem:[%s2510_s2 + $0x28] sm:$0xff]   ;;  %v2116_v6 = vld [vmem:[%s2510_s2 + $0x38] sm:$0xff]   ;;  %vm1043_vm2 = vcmask 64512  }
   0xe   : > { %1918 = vmatpush3.bf16.msra.mxu0 %v2111_v0  ;;  %1921 = vmatprep.mubr.msk.bf16.mxu0 %vm2178_vm0, %v2177_v1  ;;  %s337_s22 = scalar_lea.vmem %s2508_s0, %s2262_s17  ;;  %v2117_v8 = vld [vmem:[%s2510_s2 + $0x20] sm:$0xff]   ;;  %v2118_v9 = vld [vmem:[%s2510_s2 + $0x30] sm:$0xff]   ;;  %v2119_v10 = vld [vmem:[%s2511_s3 + $0x8] sm:$0xff]   ;;  %s341_s21 = scalar_lea.vmem %s2509_s1, %s2262_s17  ;;  %vm1295_vm3 = vcmask 1043456   ;;  %vm1709_vm5 = vcmask 257024  }
   0xf   : > { %1926 = vmatpush3.bf16.msra.mxu1 %v2112_v2  ;;  %1919 = vmatprep.subr.bf16.mxu0 %v2177_v1  ;;  %v2275_v7 = vld [vmem:[%s337_s22] sm:$0xf]  ;;  %v2120_v11 = vld [vmem:[%s2511_s3 + $0x18] sm:$0xff]   ;;  %v2122_v13 = vld [vmem:[%s2511_s3 + $0x10] sm:$0xff]   ;;  %s348_s24 = scalar_lea.vmem %s2516_s8, %s2262_s17 }
  0x10   : > { %1927 = vmatprep.subr.bf16.mxu1 %v2177_v1  ;;  %1929 = vmatprep.mubr.msk.bf16.mxu1 %vm2178_vm0, %v2177_v1  ;;  %v2121_v12 = vld [vmem:[%s2511_s3] sm:$0xff]   ;;  %v2123_v15 = vld [vmem:[%s2511_s3 + $0x28] sm:$0xff]   ;;  %v2124_v16 = vld [vmem:[%s2511_s3 + $0x38] sm:$0xff]  }
  0x11   : > { %v351_v14 = vld [vmem:[%s341_s21] sm:$0xf]  ;;  %v2126_v18 = vld [vmem:[%s2511_s3 + $0x30] sm:$0xff]   ;;  %v2127_v19 = vld [vmem:[%s2512_s4 + $0x8] sm:$0xff]  }
  0x12   : > { %1920 = vmatpush3.bf16.msra.mxu0 %v2113_v3  ;;  %v2125_v17 = vld [vmem:[%s2511_s3 + $0x20] sm:$0xff]   ;;  %v2129_v21 = vld [vmem:[%s2512_s4 + $0x18] sm:$0xff]   ;;  %v2130_v22 = vld [vmem:[%s2512_s4 + $0x10] sm:$0xff]  }
  0x13   : > { %1928 = vmatpush3.bf16.msra.mxu1 %v2114_v4  ;;  %1933 = vmatprep.subr.bf16.mxu0 %v2177_v1  ;;  %v2128_v20 = vld [vmem:[%s2512_s4] sm:$0xff]   ;;  %v2131_v23 = vld [vmem:[%s2512_s4 + $0x28] sm:$0xff]   ;;  %v2133_v25 = vld [vmem:[%s2512_s4 + $0x38] sm:$0xff]  }
  0x14   : > { %1941 = vmatprep.subr.bf16.mxu1 %v2177_v1  ;;  %v2132_v24 = vld [vmem:[%s2512_s4 + $0x20] sm:$0xff]   ;;  %v2134_v26 = vld [vmem:[%s2512_s4 + $0x30] sm:$0xff]  }
  0x15   : > { %1922 = vmatmul.mubr.msk.bf16.vlgmr.msra.gmra.mxu0 %vm380_vm1, %v2275_v7 }
  0x16   : > { %1930 = vmatmul.mubr.msk.bf16.vlgmr.msra.gmra.mxu1 %vm380_vm1, %v2275_v7  ;;  %1934 = vmatpush3.bf16.msra.mxu0 %v2115_v5 }
  0x17   : > { %1942 = vmatpush3.bf16.msra.mxu1 %v2116_v6  ;;  %1935 = vmatprep.subr.bf16.mxu0 %v2177_v1 }
  0x18   : > { %1943 = vmatprep.subr.bf16.mxu1 %v2177_v1  ;;  %1937 = vmatprep.mubr.msk.bf16.mxu0 %vm2178_vm0, %v2177_v1 }
  0x19   : > { %1945 = vmatprep.mubr.msk.bf16.mxu1 %vm2178_vm0, %v2177_v1 }
  0x1a   : > { %1936 = vmatpush3.bf16.msra.mxu0 %v2117_v8 }
  0x1b   : > { %1944 = vmatpush3.bf16.msra.mxu1 %v2118_v9  ;;  %1949 = vmatprep.subr.bf16.mxu0 %v2177_v1 }
  0x1c   : > { %1957 = vmatprep.subr.bf16.mxu1 %v2177_v1 }
  0x1d   : > { %1938 = vmatmul.mubr.msk.bf16.vlgmr.msra.gmra.mxu0 %vm380_vm1, %v2275_v7 }
  0x1e   : > { %1946 = vmatmul.mubr.msk.bf16.vlgmr.msra.gmra.mxu1 %vm380_vm1, %v2275_v7  ;;  %1950 = vmatpush3.bf16.msra.mxu0 %v2119_v10 }
  0x1f   : > { %1958 = vmatpush3.bf16.msra.mxu1 %v2120_v11  ;;  %1951 = vmatprep.subr.bf16.mxu0 %v2177_v1 }
  0x20   : > { %1959 = vmatprep.subr.bf16.mxu1 %v2177_v1  ;;  %1953 = vmatprep.mubr.msk.bf16.mxu0 %vm2178_vm0, %v2177_v1 }
  0x21   : > { %1961 = vmatprep.mubr.msk.bf16.mxu1 %vm2178_vm0, %v2177_v1 }
  0x22   : > { %1952 = vmatpush3.bf16.msra.mxu0 %v2121_v12 }
  0x23   : > { %1960 = vmatpush3.bf16.msra.mxu1 %v2122_v13  ;;  %1965 = vmatprep.subr.bf16.mxu0 %v2177_v1 }
  0x24   : > { %1973 = vmatprep.subr.bf16.mxu1 %v2177_v1 }
  0x25   : > { %1954 = vmatmul.mubr.msk.bf16.vlgmr.msra.gmra.mxu0 %vm380_vm1, %v351_v14 }
  0x26   : > { %1962 = vmatmul.mubr.msk.bf16.vlgmr.msra.gmra.mxu1 %vm380_vm1, %v351_v14  ;;  %1966 = vmatpush3.bf16.msra.mxu0 %v2123_v15 }
  0x27   : > { %1974 = vmatpush3.bf16.msra.mxu1 %v2124_v16  ;;  %1967 = vmatprep.subr.bf16.mxu0 %v2177_v1 }
  0x28   : > { %1975 = vmatprep.subr.bf16.mxu1 %v2177_v1  ;;  %1969 = vmatprep.mubr.msk.bf16.mxu0 %vm2178_vm0, %v2177_v1 }
  0x29   : > { %1977 = vmatprep.mubr.msk.bf16.mxu1 %vm2178_vm0, %v2177_v1 }
  0x2a   : > { %1968 = vmatpush3.bf16.msra.mxu0 %v2125_v17 }
  0x2b   : > { %1976 = vmatpush3.bf16.msra.mxu1 %v2126_v18  ;;  %1981 = vmatprep.subr.bf16.mxu0 %v2177_v1 }
  0x2c   : > { %1989 = vmatprep.subr.bf16.mxu1 %v2177_v1 }
  0x2d   : > { %1970 = vmatmul.mubr.msk.bf16.vlgmr.msra.gmra.mxu0 %vm380_vm1, %v351_v14 }
  0x2e   : > { %1978 = vmatmul.mubr.msk.bf16.vlgmr.msra.gmra.mxu1 %vm380_vm1, %v351_v14  ;;  %1982 = vmatpush3.bf16.msra.mxu0 %v2127_v19 }
  0x2f   : > { %1983 = vmatprep.subr.bf16.mxu0 %v2177_v1  ;;  %1985 = vmatprep.mubr.msk.bf16.mxu0 %vm2178_vm0, %v2177_v1 }
  0x30   : > { %1993 = vmatprep.mubr.msk.bf16.mxu1 %vm2178_vm0, %v2177_v1  ;;  %1990 = vmatpush3.bf16.msra.mxu1 %v2129_v21 }
  0x31   : > { %1991 = vmatprep.subr.bf16.mxu1 %v2177_v1 }
  0x32   : > { %1984 = vmatpush3.bf16.msra.mxu0 %v2128_v20 }
  0x33   : > { %1997 = vmatprep.subr.bf16.mxu0 %v2177_v1 }
  0x34   : > { %1992 = vmatpush3.bf16.msra.mxu1 %v2130_v22 }
  0x35   : > { %1986 = vmatmul.mubr.msk.bf16.vlgmr.msra.gmra.mxu0 %vm380_vm1, %v351_v14  ;;  %2005 = vmatprep.subr.bf16.mxu1 %v2177_v1 }
  0x36   : > { %1998 = vmatpush3.bf16.msra.mxu0 %v2131_v23  ;;  %2001 = vmatprep.mubr.msk.bf16.mxu0 %vm2178_vm0, %v2177_v1 }
  0x37   : > { %1999 = vmatprep.subr.bf16.mxu0 %v2177_v1  ;;  %1994 = vmatmul.mubr.msk.bf16.vlgmr.msra.gmra.mxu1 %vm380_vm1, %v351_v14 }
  0x38   : > { %2006 = vmatpush3.bf16.msra.mxu1 %v2133_v25  ;;  %2009 = vmatprep.mubr.msk.bf16.mxu1 %vm2178_vm0, %v2177_v1 }
  0x39   : > { %2007 = vmatprep.subr.bf16.mxu1 %v2177_v1 }
  0x3a   : > { %2000 = vmatpush3.bf16.msra.mxu0 %v2132_v24 }
  0x3b   : > { %2013 = vmatprep.subr.bf16.mxu0 %v2177_v1 }
  0x3c   : > { %2008 = vmatpush3.bf16.msra.mxu1 %v2134_v26 }
  0x3d   : > { %2002 = vmatmul.mubr.msk.bf16.vlgmr.msra.gmra.mxu0 %vm380_vm1, %v351_v14  ;;  %2019 = vmatprep.subr.bf16.mxu1 %v2177_v1 }
  0x3e   : > { %2015 = vmatprep.mubr.msk.bf16.mxu0 %vm2178_vm0, %v2177_v1 }
  0x3f   : > { %2010 = vmatmul.mubr.msk.bf16.vlgmr.msra.gmra.mxu1 %vm380_vm1, %v351_v14 }
  0x40   : > { %2021 = vmatprep.mubr.msk.bf16.mxu1 %vm2178_vm0, %v2177_v1 }
  0xd5   : > { %v418_v27 = vpop.f32.mrf.mxu0 }
  0xd6   : > { %v470_v28 = vpop.f32.mrf.mxu1  ;;  %v580_v56 = vpack.c.bf16 %v418_v27, %v418_v27 }
  0xd7   : > { %v1923_v29 = vpop.f32.mrf.mxu0  ;;  %v581_v59 = vpack.c.bf16 %v470_v28, %v470_v28 }
  0xd8   : > { %v1931_v30 = vpop.f32.mrf.mxu1  ;;  %v1233_v29 = vlaneseq }
  0xd9   : > { %v421_v31 = vpop.f32.mrf.mxu0 }
  0xda   : > { %v473_v32 = vpop.f32.mrf.mxu1  ;;  %v1234_v30 = vshrl.u32 %v1233_v29, 7  ;;  %v1238_v31 = vand.u32 127, %v1233_v29 }
  0xdb   : > { %v1924_v33 = vpop.f32.mrf.mxu0 }
  0xdc   : > { %v1932_v34 = vpop.f32.mrf.mxu1  ;;  %vm1239_vm4 = vcmp.le.s32.totalorder %v1238_v31, %v1234_v30 }
  0xdd   : > { %v522_v35 = vpop.f32.mrf.mxu0 }
  0xde   : > { %v574_v36 = vpop.f32.mrf.mxu1  ;;  %v582_v6 = vpack.c.bf16 %v522_v35, %v522_v35 }
  0xdf   : > { %v1939_v37 = vpop.f32.mrf.mxu0  ;;  %v583_v8 = vpack.c.bf16 %v574_v36, %v574_v36 }
  0xe0   : > { %v1947_v38 = vpop.f32.mrf.mxu1 }
  0xe1   : > { %v525_v39 = vpop.f32.mrf.mxu0 }
  0xe2   : > { %v577_v40 = vpop.f32.mrf.mxu1 }
  0xe3   : > { %v1940_v41 = vpop.f32.mrf.mxu0 }
  0xe4   : > { %v1948_v42 = vpop.f32.mrf.mxu1 }
  0xe5   : > { %v649_v43 = vpop.f32.mrf.mxu0 }
  0xe6   : > { %v811_v44 = vpack.c.bf16 %v649_v43, %v649_v43  ;;  %v701_v45 = vpop.f32.mrf.mxu1 }
  0xe7   : > { %v812_v46 = vpack.c.bf16 %v701_v45, %v701_v45  ;;  %v1955_v47 = vpop.f32.mrf.mxu0 }
  0xe8   : > { %v1048_v48 = vsel %vm1043_vm2, %v811_v44, 0  ;;  %v1963_v49 = vpop.f32.mrf.mxu1 }
  0xe9   : > { %v1094_v50 = vsel %vm1043_vm2, %v812_v46, 0  ;;  %v652_v51 = vpop.f32.mrf.mxu0  ;;  %2014 = vmatpush3.bf16.xpose.msra.mxu0 %v1048_v48 }
  0xea   : > { %v704_v52 = vpop.f32.mrf.mxu1  ;;  %2020 = vmatpush3.bf16.xpose.msra.mxu1 %v1094_v50  ;;  %2025 = vmatprep.subr.bf16.mxu0 %v2177_v1 }
  0xeb   : > { %v1956_v53 = vpop.f32.mrf.mxu0  ;;  %2031 = vmatprep.subr.bf16.mxu1 %v2177_v1 }
  0xec   : > { %v1964_v54 = vpop.f32.mrf.mxu1 }
  0xed   : > { %v753_v55 = vpop.f32.mrf.mxu0 }
  0xee   : > { %v813_v57 = vpack.c.bf16 %v753_v55, %v753_v55  ;;  %v805_v58 = vpop.f32.mrf.mxu1 }
  0xef   : > { %v814_v60 = vpack.c.bf16 %v805_v58, %v805_v58  ;;  %v1971_v61 = vpop.f32.mrf.mxu0 }
  0xf0   : > { %v1140_v62 = vsel %vm1043_vm2, %v813_v57, 0  ;;  %v1979_v63 = vpop.f32.mrf.mxu1  ;;  %2016 = vmatmul.mubr.msk.bf16.vlgmr.msra.gmra.mxu0 %vm1043_vm2, %v580_v56 }
  0xf1   : > { %v1186_v0 = vsel %vm1043_vm2, %v814_v60, 0  ;;  %2022 = vmatmul.mubr.msk.bf16.vlgmr.msra.gmra.mxu1 %vm1043_vm2, %v581_v59  ;;  %v756_v2 = vpop.f32.mrf.mxu0  ;;  %2026 = vmatpush3.bf16.xpose.msra.mxu0 %v1140_v62 }
  0xf2   : > { %v808_v3 = vpop.f32.mrf.mxu1  ;;  %2032 = vmatpush3.bf16.xpose.msra.mxu1 %v1186_v0  ;;  %2027 = vmatprep.mubr.msk.bf16.mxu0 %vm2178_vm0, %v2177_v1 }
  0xf3   : > { %v1972_v4 = vpop.f32.mrf.mxu0  ;;  %2033 = vmatprep.mubr.msk.bf16.mxu1 %vm2178_vm0, %v2177_v1  ;;  %2037 = vmatprep.subr.bf16.mxu0 %v2177_v1 }
  0xf4   : > { %v1980_v5 = vpop.f32.mrf.mxu1  ;;  %2043 = vmatprep.subr.bf16.mxu1 %v2177_v1 }
  0xf5   : > { %v877_v9 = vpop.f32.mrf.mxu0 }
  0xf6   : > { %v1039_v10 = vpack.c.bf16 %v877_v9, %v877_v9 }
  0xf7   : > { %v1987_v11 = vpop.f32.mrf.mxu0  ;;  %v929_v14 = vpop.f32.mrf.mxu1 }
  0xf8   : > { %2028 = vmatmul.mubr.msk.bf16.vlgmr.msra.gmra.mxu0 %vm1043_vm2, %v582_v6  ;;  %v1297_v12 = vsel %vm1295_vm3, %v1039_v10, 0  ;;  %v1040_v15 = vpack.c.bf16 %v929_v14, %v929_v14 }
  0xf9   : > { %2034 = vmatmul.mubr.msk.bf16.vlgmr.msra.gmra.mxu1 %vm1043_vm2, %v583_v8  ;;  %2039 = vmatprep.mubr.msk.bf16.mxu0 %vm2178_vm0, %v2177_v1  ;;  %v880_v13 = vpop.f32.mrf.mxu0  ;;  %v1995_v17 = vpop.f32.mrf.mxu1 }
  0xfa   : > { %2045 = vmatprep.mubr.msk.bf16.mxu1 %vm2178_vm0, %v2177_v1  ;;  %2038 = vmatpush3.bf16.msra.mxu0 %v1297_v12  ;;  %v1343_v18 = vsel %vm1295_vm3, %v1040_v15, 0 }
  0xfb   : > { %2049 = vmatprep.subr.bf16.mxu0 %v2177_v1  ;;  %v1988_v16 = vpop.f32.mrf.mxu0  ;;  %v932_v19 = vpop.f32.mrf.mxu1  ;;  %2044 = vmatpush3.bf16.msra.mxu1 %v1343_v18 }
  0xfc   : > { %2055 = vmatprep.subr.bf16.mxu1 %v2177_v1 }
  0xfd   : > { %v2419_v20 = vpop.f32.mrf.mxu0  ;;  %v1996_v21 = vpop.f32.mrf.mxu1 }
  0xff   : > { %v2003_v22 = vpop.f32.mrf.mxu0  ;;  %v2422_v24 = vpop.f32.mrf.mxu1 }
 0x100   : > { %v1042_v30 = vpack.c.bf16 %v2422_v24, %v2422_v24 }
 0x101   : > { %v984_v23 = vpop.f32.mrf.mxu0  ;;  %v2011_v26 = vpop.f32.mrf.mxu1 }
 0x103   : > { %v2004_v25 = vpop.f32.mrf.mxu0  ;;  %v1036_v27 = vpop.f32.mrf.mxu1 }
 0x104   : > { %v1041_v25 = vpack.c.bf16 %v2419_v20, %v2419_v20  ;;  %v1481_v20 = vld [vmem:[%s2513_s5] sm:$0xf] }
 0x105   : > { %v2012_v28 = vpop.f32.mrf.mxu1 }
 0x106   : > { %v1389_v29 = vsel %vm1295_vm3, %v1041_v25, 0 }
 0x1b0   : > { %v1084_v32 = vpop.f32.mrf.mxu0 }
 0x1b1   : > { %v1228_v33 = vmul.f32 0.35355338, %v1084_v32  ;;  %v1130_v34 = vpop.f32.mrf.mxu1 }
 0x1b2   : > { %v1229_v35 = vmul.f32 0.35355338, %v1130_v34  ;;  %v2017_v36 = vpop.f32.mrf.mxu0  ;;  %v1435_v34 = vsel %vm1295_vm3, %v1042_v30, 0 }
 0x1b3   : > { %v2023_v37 = vpop.f32.mrf.mxu1  ;;  %v1240_v38 = vsel %vm1239_vm4, %v1228_v33, -1e+09  ;;  %v1489_v36 = vsel %vm1295_vm3, %v1481_v20, 0 }
 0x1b4   : > { %v1087_v39 = vpop.f32.mrf.mxu0  ;;  %v1244_v40 = vsel %vm1043_vm2, %v1240_v38, -inf  ;;  %v1241_v42 = vsel %vm1239_vm4, %v1229_v35, -1e+09 }
 0x1b5   : > { %v1133_v41 = vpop.f32.mrf.mxu1  ;;  %1245 = vmax.xlane.f32.xlu0 %v1244_v40  ;;  %v1247_v46 = vsel %vm1043_vm2, %v1241_v42, -inf  ;;  %v1482_v40 = vld [vmem:[%s2513_s5 + $0x4] sm:$0xf] }
 0x1b6   : > { %v2018_v43 = vpop.f32.mrf.mxu0  ;;  %v1535_v41 = vsel %vm1295_vm3, %v1482_v40, 0 }
 0x1b7   : > { %v2024_v44 = vpop.f32.mrf.mxu1 }
 0x1b8   : > { %v1176_v45 = vpop.f32.mrf.mxu0 }
 0x1b9   : > { %v1230_v47 = vmul.f32 0.35355338, %v1176_v45  ;;  %v1222_v48 = vpop.f32.mrf.mxu1  ;;  %1248 = vmax.xlane.f32.xlu0 %v1247_v46 }
 0x1ba   : > { %v1231_v49 = vmul.f32 0.35355338, %v1222_v48  ;;  %v2029_v50 = vpop.f32.mrf.mxu0 }
 0x1bb   : > { %v2035_v51 = vpop.f32.mrf.mxu1  ;;  %v1242_v52 = vsel %vm1239_vm4, %v1230_v47, -1e+09  ;;  %v1484_v47 = vld [vmem:[%s2513_s5 + $0xc] sm:$0xf] }
 0x1bc   : > { %v1179_v53 = vpop.f32.mrf.mxu0  ;;  %v1250_v54 = vsel %vm1043_vm2, %v1242_v52, -inf  ;;  %v1243_v56 = vsel %vm1239_vm4, %v1231_v49, -1e+09  ;;  %v1627_v51 = vsel %vm1295_vm3, %v1484_v47, 0 }
 0x1bd   : > { %v1225_v55 = vpop.f32.mrf.mxu1  ;;  %1251 = vmax.xlane.f32.xlu1 %v1250_v54  ;;  %v1253_v59 = vsel %vm1043_vm2, %v1243_v56, -inf }
 0x1be   : > { %v2030_v57 = vpop.f32.mrf.mxu0 }
 0x1bf   : > { %v2036_v58 = vpop.f32.mrf.mxu1 }
 0x1c1   : > { %1254 = vmax.xlane.f32.xlu1 %v1253_v59 }
 0x23e   : > { %v1246_v60 = vpop.xlane.xlu0 %1245 }
 0x23f   : > { %v1256_v61 = vsub.f32 %v1240_v38, %v1246_v60 }
 0x241   : > { %v1260_v62 = vmul.f32 1.442695, %v1256_v61 }
 0x242   : > { %v1249_v63 = vpop.xlane.xlu0 %1248 }
 0x243   : > { %2135 = vpow2.f32 %v1260_v62  ;;  %v1257_v0 = vsub.f32 %v1241_v42, %v1249_v63  ;;  %v1483_v42 = vld [vmem:[%s2513_s5 + $0x8] sm:$0xf] }
 0x244   : > { %v1581_v45 = vsel %vm1295_vm3, %v1483_v42, 0 }
 0x245   : > { %v1262_v2 = vmul.f32 1.442695, %v1257_v0 }
 0x246   : > { %v1252_v3 = vpop.xlane.xlu1 %1251 }
 0x247   : > { %2137 = vpow2.f32 %v1262_v2  ;;  %v1258_v4 = vsub.f32 %v1242_v52, %v1252_v3 }
 0x249   : > { %v1264_v5 = vmul.f32 1.442695, %v1258_v4 }
 0x24a   : > { %v1255_v6 = vpop.xlane.xlu1 %1254 }
 0x24b   : > { %2139 = vpow2.f32 %v1264_v5  ;;  %v1259_v8 = vsub.f32 %v1243_v56, %v1255_v6 }
 0x24d   : > { %v1266_v9 = vmul.f32 1.442695, %v1259_v8 }
 0x24f   : > { %2141 = vpow2.f32 %v1266_v9 }
 0x250   : > { %v2136_v10 = vpop.eup %2135 }
 0x251   : > { %v1268_v11 = vsel %vm1043_vm2, %v2136_v10, 0.0 }
 0x252   : > { %1269 = vadd.xlane.f32.xlu0 %v1268_v11 }
 0x254   : > { %v2138_v12 = vpop.eup %2137 }
 0x255   : > { %v1271_v13 = vsel %vm1043_vm2, %v2138_v12, 0.0 }
 0x256   : > { %1272 = vadd.xlane.f32.xlu1 %v1271_v13 }
 0x258   : > { %v2140_v14 = vpop.eup %2139 }
 0x259   : > { %v1274_v15 = vsel %vm1043_vm2, %v2140_v14, 0.0 }
 0x25a   : > { %1275 = vadd.xlane.f32.xlu0 %v1274_v15 }
 0x25c   : > { %v2142_v16 = vpop.eup %2141 }
 0x25d   : > { %v1277_v17 = vsel %vm1043_vm2, %v2142_v16, 0.0 }
 0x25e   : > { %1278 = vadd.xlane.f32.xlu1 %v1277_v17 }
 0x2db   : > { %v1270_v18 = vpop.xlane.xlu0 %1269 }
 0x2dc   : > { %2143 = vrcp.f32 %v1270_v18 }
 0x2df   : > { %v1273_v19 = vpop.xlane.xlu1 %1272 }
 0x2e0   : > { %2145 = vrcp.f32 %v1273_v19 }
 0x2e3   : > { %v1276_v21 = vpop.xlane.xlu0 %1275 }
 0x2e4   : > { %2147 = vrcp.f32 %v1276_v21  ;;  %v1676_v21 = vunpack.c.l.bf16 %v2275_v7 }
 0x2e7   : > { %v1279_v22 = vpop.xlane.xlu1 %1278 }
 0x2e8   : > { %2149 = vrcp.f32 %v1279_v22 }
 0x2e9   : > { %v2144_v23 = vpop.eup %2143 }
 0x2ea   : > { %v1284_v26 = vmul.f32 %v2144_v23, %v2136_v10 }
 0x2ec   : > { %v1288_v27 = vpack.c.bf16 %v1284_v26, %v1284_v26 }
 0x2ed   : > { %v2146_v28 = vpop.eup %2145 }
 0x2ee   : > { %2040 = vmatmul.mubr.msk.bf16.vlgmr.msra.gmra.mxu0 %vm1043_vm2, %v1288_v27  ;;  %v1285_v31 = vmul.f32 %v2146_v28, %v2138_v12 }
 0x2ef   : > { %2050 = vmatpush3.bf16.msra.mxu0 %v1389_v29  ;;  %2051 = vmatprep.mubr.msk.bf16.mxu0 %vm2178_vm0, %v2177_v1 }
 0x2f0   : > { %v1289_v32 = vpack.c.bf16 %v1285_v31, %v1285_v31  ;;  %2061 = vmatprep.subr.bf16.mxu0 %v2177_v1 }
 0x2f1   : > { %v2148_v33 = vpop.eup %2147 }
 0x2f2   : > { %2046 = vmatmul.mubr.msk.bf16.vlgmr.msra.gmra.mxu1 %vm1043_vm2, %v1289_v32  ;;  %v1286_v24 = vmul.f32 %v2148_v33, %v2140_v14 }
 0x2f3   : > { %2056 = vmatpush3.bf16.msra.mxu1 %v1435_v34  ;;  %2057 = vmatprep.mubr.msk.bf16.mxu1 %vm2178_vm0, %v2177_v1 }
 0x2f4   : > { %v1290_v35 = vpack.c.bf16 %v1286_v24, %v1286_v24  ;;  %2067 = vmatprep.subr.bf16.mxu1 %v2177_v1 }
 0x2f5   : > { %v2150_v37 = vpop.eup %2149 }
 0x2f6   : > { %2052 = vmatmul.mubr.msk.bf16.vlgmr.msra.gmra.mxu0 %vm1043_vm2, %v1290_v35  ;;  %v1287_v38 = vmul.f32 %v2150_v37, %v2142_v16  ;;  %v1853_v37 = vld [vmem:[%s2514_s6] ss:$0 sm:$0xff] }
 0x2f7   : > { %2062 = vmatpush3.bf16.msra.mxu0 %v1489_v36  ;;  %2063 = vmatprep.mubr.msk.bf16.mxu0 %vm2178_vm0, %v2177_v1 }
 0x2f8   : > { %v1291_v39 = vpack.c.bf16 %v1287_v38, %v1287_v38  ;;  %2073 = vmatprep.subr.bf16.mxu0 %v2177_v1 }
 0x2fa   : > { %2058 = vmatmul.mubr.msk.bf16.vlgmr.msra.gmra.mxu1 %vm1043_vm2, %v1291_v39  ;;  %v1854_v39 = vld [vmem:[%s2515_s7] ss:$0 sm:$0xff] }
 0x2fb   : > { %2069 = vmatprep.mubr.msk.bf16.mxu1 %vm2178_vm0, %v2177_v1  ;;  %2068 = vmatpush3.bf16.msra.mxu1 %v1535_v41 }
 0x2fc   : > { %2079 = vmatprep.subr.bf16.mxu1 %v2177_v1 }
 0x3ae   : > { %v1333_v43 = vpop.f32.mrf.mxu0 }
 0x3af   : > { %v1477_v44 = vpack.c.bf16 %v1333_v43, %v1333_v43 }
 0x3b0   : > { %v2041_v46 = vpop.f32.mrf.mxu0 }
 0x3b1   : > { %2064 = vmatmul.mubr.msk.bf16.vlgmr.msra.gmra.mxu0 %vm1043_vm2, %v1477_v44 }
 0x3b2   : > { %v1336_v48 = vpop.f32.mrf.mxu0  ;;  %v1379_v49 = vpop.f32.mrf.mxu1  ;;  %2074 = vmatpush3.bf16.msra.mxu0 %v1581_v45  ;;  %2075 = vmatprep.mubr.msk.bf16.mxu0 %vm2178_vm0, %v2177_v1 }
 0x3b3   : > { %v1478_v50 = vpack.c.bf16 %v1379_v49, %v1379_v49 }
 0x3b4   : > { %v2042_v52 = vpop.f32.mrf.mxu0  ;;  %v2047_v53 = vpop.f32.mrf.mxu1 }
 0x3b5   : > { %2070 = vmatmul.mubr.msk.bf16.vlgmr.msra.gmra.mxu1 %vm1043_vm2, %v1478_v50 }
 0x3b6   : > { %v1382_v54 = vpop.f32.mrf.mxu1  ;;  %v1425_v55 = vpop.f32.mrf.mxu0  ;;  %2080 = vmatpush3.bf16.msra.mxu1 %v1627_v51  ;;  %2081 = vmatprep.mubr.msk.bf16.mxu1 %vm2178_vm0, %v2177_v1 }
 0x3b7   : > { %v1479_v56 = vpack.c.bf16 %v1425_v55, %v1425_v55 }
 0x3b8   : > { %v2048_v57 = vpop.f32.mrf.mxu1  ;;  %v2053_v58 = vpop.f32.mrf.mxu0 }
 0x3b9   : > { %2076 = vmatmul.mubr.msk.bf16.vlgmr.msra.gmra.mxu0 %vm1043_vm2, %v1479_v56 }
 0x3ba   : > { %v1428_v59 = vpop.f32.mrf.mxu0  ;;  %v1471_v60 = vpop.f32.mrf.mxu1 }
 0x3bb   : > { %v1480_v61 = vpack.c.bf16 %v1471_v60, %v1471_v60 }
 0x3bc   : > { %v2054_v62 = vpop.f32.mrf.mxu0  ;;  %v2059_v63 = vpop.f32.mrf.mxu1 }
 0x3bd   : > { %2082 = vmatmul.mubr.msk.bf16.vlgmr.msra.gmra.mxu1 %vm1043_vm2, %v1480_v61 }
 0x3be   : > { %v1474_v0 = vpop.f32.mrf.mxu1 }
 0x3c0   : > { %v2060_v2 = vpop.f32.mrf.mxu1 }
 0x471   : > { %v1525_v3 = vpop.f32.mrf.mxu0 }
 0x472   : > { %v1669_v12 = vsel %vm380_vm1, %v1525_v3, 0.0 }
 0x473   : > { %v2065_v4 = vpop.f32.mrf.mxu0 }
 0x475   : > { %v1528_v5 = vpop.f32.mrf.mxu0  ;;  %v1571_v6 = vpop.f32.mrf.mxu1 }
 0x476   : > { %v1670_v9 = vsel %vm380_vm1, %v1571_v6, 0.0 }
 0x477   : > { %v2066_v8 = vpop.f32.mrf.mxu0  ;;  %v2071_v1 = vpop.f32.mrf.mxu1  ;;  %v1671_v14 = vadd.f32 %v1670_v9, %v1669_v12 }
 0x479   : > { %v1574_v10 = vpop.f32.mrf.mxu1  ;;  %v1617_v11 = vpop.f32.mrf.mxu0 }
 0x47a   : > { %v1672_v13 = vsel %vm380_vm1, %v1617_v11, 0.0 }
 0x47b   : > { %v2072_v15 = vpop.f32.mrf.mxu1  ;;  %v2077_v16 = vpop.f32.mrf.mxu0  ;;  %v1673_v17 = vadd.f32 %v1672_v13, %v1671_v14 }
 0x47d   : > { %v1620_v18 = vpop.f32.mrf.mxu0  ;;  %v1663_v19 = vpop.f32.mrf.mxu1 }
 0x47e   : > { %v1674_v22 = vsel %vm380_vm1, %v1663_v19, 0.0 }
 0x47f   : > { %v1675_v23 = vadd.f32 %v1674_v22, %v1673_v17  ;;  %v2078_v25 = vpop.f32.mrf.mxu0  ;;  %v2083_v26 = vpop.f32.mrf.mxu1 }
 0x481   : > { %v1666_v27 = vpop.f32.mrf.mxu1  ;;  %v1677_v28 = vadd.f32 %v1676_v21, %v1675_v23 }
 0x483   : > { %v2084_v29 = vpop.f32.mrf.mxu1  ;;  %v1678_v30 = vsel %vm380_vm1, %v1677_v28, 0.0 }
 0x484   : > { %1679 = vadd.xlane.f32.xlu0 %v1678_v30 }
 0x50d   : > { %v1680_v31 = vpop.xlane.xlu0 %1679 }
 0x50e   : > { %v1682_v32 = vmul.f32 0.03125, %v1680_v31 }
 0x510   : > { %v1683_v33 = vsub.f32 %v1677_v28, %v1682_v32 }
 0x512   : > { %v1684_v20 = vmul.f32 %v1683_v33, %v1683_v33 }
 0x514   : > { %v1685_v34 = vsel %vm380_vm1, %v1684_v20, 0.0 }
 0x515   : > { %1686 = vadd.xlane.f32.xlu1 %v1685_v34 }
 0x59e   : > { %v1687_v7 = vpop.xlane.xlu1 %1686 }
 0x59f   : > { %v1688_v24 = vmul.f32 0.03125, %v1687_v7 }
 0x5a1   : > { %v1689_v35 = vadd.f32 1e-05, %v1688_v24 }
 0x5a3   : > { %2151 = vrsqrt.f32 %v1689_v35 }
 0x5b0   : > { %v2152_v36 = vpop.eup %2151 }
 0x5b1   : > { %v1691_v38 = vmul.f32 %v2152_v36, %v1683_v33 }
 0x5b3   : > { %v1699_v40 = vmul.f32 %v1853_v37, %v1691_v38 }
 0x5b5   : > { %v1707_v41 = vadd.f32 %v1854_v39, %v1699_v40 }
 0x5b7   : > { %v1708_v42 = vpack.c.bf16 %v1707_v41, %v1707_v41 }
 0x5b9   : > { %1710 = vst.msk [vmem:[%s348_s24] sm:$0xf] %vm1709_vm5, %v1708_v42 }
 0x5ba PF: > { %s18_s29 = sadd.s32 1, %s2175_s29   ;;  %s2517_s27 = smov %s2171_s28 }
 0x5bb   : > { %p15_p5 = scmp.ge.s32.totalorder %s18_s29, 4   ;;  %s2518_s28 = smov %s2520_s30 }
 0x5bd   :  { %17 = sbr.rel (!%p15_p5) target bundleno = 2 (0x2), region = 85 }

</bundles_post_ra>
